<compile_context>
chip_gen: v7x
topology: tpu7x:2x2x1
jax: 0.10.0
libtpu: 0.0.40
codegen_flags: <defaults>
</compile_context>

<pallas_src>
import functools

import jax
import jax.numpy as jnp
from jax.experimental import pallas as pl
from jax.experimental.pallas import tpu as pltpu

C_PAD = 8  # zero-pad input channels so the first MXU contraction dim is aligned


def _round_up(x, m):
    return (x + m - 1) // m * m


# ----------------------------------------------------------------------------
# Kernel 1: shared per-point MLP (Conv1d k=1 == channelwise matmul) with a
# running global max-pool.  Grid = (B, N_tiles).
# ----------------------------------------------------------------------------
def point_mlp_kernel(x_ref,                         # (TN, 8)        bf16
                     w1_ref, b1_ref,                # (8, 64)        bf16 / (1, 64) f32
                     w2_ref, b2_ref,                # (64, 64)
                     w3_ref, b3_ref,                # (64, 128)
                     w4_ref, b4_ref,                # (128, 1024)
                     gfeat_ref):                    # (1, 1, 1024)   f32 (resident acc)
    f32 = jnp.float32
    bf16 = jnp.bfloat16
    n = pl.program_id(1)

    @pl.when(n == 0)
    def _init():
        gfeat_ref[...] = jnp.full(gfeat_ref.shape, -jnp.inf, dtype=gfeat_ref.dtype)

    x = x_ref[...]                                                       # (TN, 8) bf16
    h = jnp.dot(x, w1_ref[...], preferred_element_type=f32) + b1_ref[...]
    h = jnp.maximum(h, 0.0)                                              # (TN, 64)
    h = jnp.dot(h.astype(bf16), w2_ref[...], preferred_element_type=f32) + b2_ref[...]
    h = jnp.maximum(h, 0.0)                                              # (TN, 64)
    h = jnp.dot(h.astype(bf16), w3_ref[...], preferred_element_type=f32) + b3_ref[...]
    h = jnp.maximum(h, 0.0)                                              # (TN, 128)
    h = jnp.dot(h.astype(bf16), w4_ref[...], preferred_element_type=f32) + b4_ref[...]
    # BN folded into w4/b4; no ReLU before the max pool (matches PyTorch).

    g_tile = jnp.max(h, axis=0)                                          # (1024,) f32
    gfeat_ref[...] = jnp.maximum(gfeat_ref[...], g_tile[None, None, :])


# ----------------------------------------------------------------------------
# Kernel 2: batched classification head (fc1/fc2/fc3 + log_softmax), M = B.
# ----------------------------------------------------------------------------
def head_kernel(g_ref,                               # (B, 1024) f32
                wf1_ref, bf1_ref,                    # (1024, 512) bf16 / (1, 512) f32
                wf2_ref, bf2_ref,                    # (512, 256)
                wf3_ref, bf3_ref,                    # (256, k)
                logp_ref):                           # (B, k) f32
    f32 = jnp.float32
    bf16 = jnp.bfloat16

    g = g_ref[...].astype(bf16)
    y = jnp.dot(g, wf1_ref[...], preferred_element_type=f32) + bf1_ref[...]
    y = jnp.maximum(y, 0.0)
    y = jnp.dot(y.astype(bf16), wf2_ref[...], preferred_element_type=f32) + bf2_ref[...]
    y = jnp.maximum(y, 0.0)
    y = jnp.dot(y.astype(bf16), wf3_ref[...], preferred_element_type=f32) + bf3_ref[...]

    # log_softmax in f32
    m = jnp.max(y, axis=-1, keepdims=True)
    z = y - m
    lse = jnp.log(jnp.sum(jnp.exp(z), axis=-1, keepdims=True))
    logp_ref[...] = z - lse


# ----------------------------------------------------------------------------
# Wrapper
# ----------------------------------------------------------------------------
_MLP_PARAMS = ("w1", "b1", "w2", "b2", "w3", "b3", "w4", "b4")
_HEAD_PARAMS = ("wf1", "bf1", "wf2", "bf2", "wf3", "bf3")


@functools.partial(jax.jit, static_argnames=("tn",))
def pointnet_forward(x_bnc, params, *, tn=512):
    """x_bnc: (B, N, C) float32 channels-last.

    Returns (log_probs (B, k), global_feat (B, 1024))."""
    B, N, C = x_bnc.shape
    k = params["wf3"].shape[1]

    # Channel zero-pad (exact: matching w1 rows are zero) + point-axis edge-pad
    # (duplicated points do not change the max pool).
    x = jnp.pad(x_bnc, ((0, 0), (0, 0), (0, C_PAD - C)))
    TN = _round_up(max(16, min(tn, _round_up(N, 16))), 16)
    N_pad = _round_up(N, TN)
    if N_pad != N:
        x = jnp.pad(x, ((0, 0), (0, N_pad - N), (0, 0)), mode="edge")
    x = x.astype(jnp.bfloat16)

    in_specs = [pl.BlockSpec((pl.Squeezed(), TN, C_PAD), lambda b, n: (b, n, 0))]
    args = [x]
    for name in _MLP_PARAMS:
        p = params[name]
        # NOTE: weight block index is constant across the grid; the pipeline
        # revisits the same block so no per-step re-DMA is needed.
        in_specs.append(pl.BlockSpec(p.shape, lambda b, n, _nd=p.ndim: (0,) * _nd))
        args.append(p)

    gfeat3 = pl.pallas_call(
        point_mlp_kernel,
        grid=(B, N_pad // TN),
        in_specs=in_specs,
        out_specs=pl.BlockSpec((1, 1, 1024), lambda b, n: (b, 0, 0)),
        out_shape=jax.ShapeDtypeStruct((B, 1, 1024), jnp.float32),
        compiler_params=pltpu.CompilerParams(
            dimension_semantics=("parallel", "arbitrary"),
        ),
    )(*args)
    gfeat = gfeat3[:, 0, :]                                              # (B, 1024)

    logp = pl.pallas_call(
        head_kernel,
        out_shape=jax.ShapeDtypeStruct((B, k), jnp.float32),
    )(gfeat, *[params[name] for name in _HEAD_PARAMS])

    return logp, gfeat


# ----------------------------------------------------------------------------
# Deterministic parameter construction (PyTorch-style init) + BN folding.
# Weights stored as (C_in, C_out) bf16, biases as (1, C_out) f32.
# ----------------------------------------------------------------------------
def _linear_init(key, fan_in, fan_out):
    bound = 1.0 / (fan_in ** 0.5)
    kw, kb = jax.random.split(key)
    w = jax.random.uniform(kw, (fan_out, fan_in), jnp.float32, -bound, bound)
    b = jax.random.uniform(kb, (fan_out,), jnp.float32, -bound, bound)
    return w, b


def _bn_init(key, c):
    kg, kb, km, kv = jax.random.split(key, 4)
    gamma = 1.0 + 0.1 * jax.random.normal(kg, (c,), jnp.float32)
    beta = 0.1 * jax.random.normal(kb, (c,), jnp.float32)
    mean = 0.1 * jax.random.normal(km, (c,), jnp.float32)
    var = jnp.abs(jax.random.normal(kv, (c,), jnp.float32)) + 0.5
    return gamma, beta, mean, var


def _fold_bn(w, b, bn, eps=1e-5):
    gamma, beta, mean, var = bn
    scale = gamma / jnp.sqrt(var + eps)
    return w * scale[:, None], b * scale + beta - mean * scale


def init_params(key, channel=3, k=40):
    keys = jax.random.split(key, 14)
    dims = [
        ("1", channel, 64), ("2", 64, 64), ("3", 64, 128), ("4", 128, 1024),   # convs1..4 (+BN)
        ("f1", 1024, 512), ("f2", 512, 256),                                   # fc1, fc2 (+BN)
    ]
    params = {}
    ki = 0
    for tag, cin, cout in dims:
        w, b = _linear_init(keys[ki], cin, cout); ki += 1
        bn = _bn_init(keys[ki], cout); ki += 1
        w_eff, b_eff = _fold_bn(w, b, bn)
        wt = w_eff.T                                      # (cin, cout)
        if tag == "1":
            wt = jnp.pad(wt, ((0, C_PAD - cin), (0, 0)))  # align first contraction dim
        params["w" + tag] = wt.astype(jnp.bfloat16)
        params["b" + tag] = b_eff[None, :].astype(jnp.float32)
    # fc3: no batch norm
    w3, b3 = _linear_init(keys[ki], 256, k)
    params["wf3"] = w3.T.astype(jnp.bfloat16)
    params["bf3"] = b3[None, :].astype(jnp.float32)
    return params


# ----------------------------------------------------------------------------
# Pure-JAX reference (same math, mirrors the bf16 matmul inputs / f32 accum).
# ----------------------------------------------------------------------------
def pointnet_ref(x_bnc, params):
    bf16, f32 = jnp.bfloat16, jnp.float32
    B, N, C = x_bnc.shape
    x = jnp.pad(x_bnc, ((0, 0), (0, 0), (0, C_PAD - C)))

    def lin(h, w, b, relu=True):
        y = jnp.dot(h.astype(bf16), w, preferred_element_type=f32) + b
        return jnp.maximum(y, 0.0) if relu else y

    h = lin(x, params["w1"], params["b1"])
    h = lin(h, params["w2"], params["b2"])
    h = lin(h, params["w3"], params["b3"])
    h = lin(h, params["w4"], params["b4"], relu=False)
    g = jnp.max(h, axis=1)
    y = lin(g, params["wf1"], params["bf1"])
    y = lin(y, params["wf2"], params["bf2"])
    y = lin(y, params["wf3"], params["bf3"], relu=False)
    return jax.nn.log_softmax(y, axis=1), g


if __name__ == "__main__":
    key = jax.random.PRNGKey(0)
    k_params, k_x = jax.random.split(key)

    B, C, N, K = 2, 3, 64, 40
    params = init_params(k_params, channel=C, k=K)

    # PyTorch-style input layout (B, C, N) -> channels-last (B, N, C) for kernel.
    x_bcn = jax.random.normal(k_x, (B, C, N), jnp.float32)
    x_bnc = jnp.transpose(x_bcn, (0, 2, 1))

    # tn=32 -> two N-tiles per sample, exercising the running-max accumulator.
    logp, gfeat = pointnet_forward(x_bnc, params, tn=32)
    logp, gfeat = jax.block_until_ready((logp, gfeat))

    # Sanity checks: shapes, log_softmax normalization, and match vs pure-JAX ref.
    assert logp.shape == (B, K) and gfeat.shape == (B, 1024)
    assert bool(jnp.all(jnp.isfinite(logp))) and bool(jnp.all(jnp.isfinite(gfeat)))
    assert bool(jnp.allclose(jnp.sum(jnp.exp(logp), axis=1), 1.0, atol=1e-4))
    logp_ref, gfeat_ref = pointnet_ref(x_bnc, params)
    assert bool(jnp.allclose(logp, logp_ref, rtol=1e-2, atol=1e-2))
    assert bool(jnp.allclose(gfeat, gfeat_ref, rtol=1e-2, atol=1e-2))

    print("KERNEL_OK")
</pallas_src>

<mosaic_0001>
module attributes {stable_mosaic.version = 11 : i64} {
  func.func @point_mlp_kernel(%arg0: i32, %arg1: i32, %arg2: memref<1x32x8xbf16, #tpu.memory_space<vmem>>, %arg3: memref<8x64xbf16, #tpu.memory_space<vmem>>, %arg4: memref<1x64xf32, #tpu.memory_space<vmem>>, %arg5: memref<64x64xbf16, #tpu.memory_space<vmem>>, %arg6: memref<1x64xf32, #tpu.memory_space<vmem>>, %arg7: memref<64x128xbf16, #tpu.memory_space<vmem>>, %arg8: memref<1x128xf32, #tpu.memory_space<vmem>>, %arg9: memref<128x1024xbf16, #tpu.memory_space<vmem>>, %arg10: memref<1x1024xf32, #tpu.memory_space<vmem>>, %arg11: memref<1x1x1024xf32, #tpu.memory_space<vmem>>) attributes {dimension_semantics = [#tpu.dimension_semantics<parallel>, #tpu.dimension_semantics<arbitrary>], iteration_bounds = array<i64: 2, 2>, scalar_prefetch = 0 : i64, scratch_operands = 0 : i64, tpu.core_type = #tpu.core_type<tc>, window_params = [{transform_indices = @transform_0, window_bounds = array<i64: 1, 32, 8>}, {pipeline_mode = #tpu.pipeline_mode<synchronous>, transform_indices = @transform_1, window_bounds = array<i64: 8, 64>}, {pipeline_mode = #tpu.pipeline_mode<synchronous>, transform_indices = @transform_2, window_bounds = array<i64: 1, 64>}, {pipeline_mode = #tpu.pipeline_mode<synchronous>, transform_indices = @transform_3, window_bounds = array<i64: 64, 64>}, {pipeline_mode = #tpu.pipeline_mode<synchronous>, transform_indices = @transform_4, window_bounds = array<i64: 1, 64>}, {pipeline_mode = #tpu.pipeline_mode<synchronous>, transform_indices = @transform_5, window_bounds = array<i64: 64, 128>}, {pipeline_mode = #tpu.pipeline_mode<synchronous>, transform_indices = @transform_6, window_bounds = array<i64: 1, 128>}, {pipeline_mode = #tpu.pipeline_mode<synchronous>, transform_indices = @transform_7, window_bounds = array<i64: 128, 1024>}, {pipeline_mode = #tpu.pipeline_mode<synchronous>, transform_indices = @transform_8, window_bounds = array<i64: 1, 1024>}, {transform_indices = @transform_9, window_bounds = array<i64: 1, 1, 1024>}]} {
    %c0_i32 = arith.constant 0 : i32
    %0 = arith.cmpi eq, %arg1, %c0_i32 : i32
    %1 = arith.extui %0 : i1 to i32
    %c0_i32_0 = arith.constant 0 : i32
    %2 = arith.cmpi ne, %1, %c0_i32_0 : i32
    scf.if %2 {
      %cst_32 = arith.constant 0xFF800000 : f32
      %39 = vector.broadcast %cst_32 : f32 to vector<1x1x1024xf32>
      %c0_33 = arith.constant 0 : index
      %c0_34 = arith.constant 0 : index
      %c0_35 = arith.constant 0 : index
      %40 = vector.load %arg11[%c0_33, %c0_34, %c0_35] : memref<1x1x1024xf32, #tpu.memory_space<vmem>>, vector<1x1x1024xf32>
      tpu.vector_store %arg11[%c0_33, %c0_34, %c0_35], %39 {strides = array<i32>} : memref<1x1x1024xf32, #tpu.memory_space<vmem>>, vector<1x1x1024xf32>,
    } else {
    }
    %c0 = arith.constant 0 : index
    %c0_1 = arith.constant 0 : index
    %c0_2 = arith.constant 0 : index
    %3 = vector.load %arg2[%c0, %c0_1, %c0_2] : memref<1x32x8xbf16, #tpu.memory_space<vmem>>, vector<1x32x8xbf16>
    %4 = vector.shape_cast %3 : vector<1x32x8xbf16> to vector<32x8xbf16>
    %c0_3 = arith.constant 0 : index
    %c0_4 = arith.constant 0 : index
    %5 = vector.load %arg3[%c0_3, %c0_4] : memref<8x64xbf16, #tpu.memory_space<vmem>>, vector<8x64xbf16>
    %cst = arith.constant dense<0.000000e+00> : vector<32x64xf32>
    %6 = tpu.matmul %4, %5, %cst {dimension_numbers = #tpu.dot_dimension_numbers<[1], [0], [0], [1], [0, 0, 1, 1], [], []>} : vector<32x8xbf16>, vector<8x64xbf16>, vector<32x64xf32> -> vector<32x64xf32>
    %c0_5 = arith.constant 0 : index
    %c0_6 = arith.constant 0 : index
    %7 = vector.load %arg4[%c0_5, %c0_6] : memref<1x64xf32, #tpu.memory_space<vmem>>, vector<1x64xf32>
    %8 = vector.broadcast %7 : vector<1x64xf32> to vector<32x64xf32>
    %9 = arith.addf %6, %8 : vector<32x64xf32>
    %cst_7 = arith.constant 0.000000e+00 : f32
    %10 = vector.broadcast %cst_7 : f32 to vector<32x64xf32>
    %11 = arith.maximumf %9, %10 : vector<32x64xf32>
    %12 = arith.truncf %11 : vector<32x64xf32> to vector<32x64xbf16>
    %c0_8 = arith.constant 0 : index
    %c0_9 = arith.constant 0 : index
    %13 = vector.load %arg5[%c0_8, %c0_9] : memref<64x64xbf16, #tpu.memory_space<vmem>>, vector<64x64xbf16>
    %cst_10 = arith.constant dense<0.000000e+00> : vector<32x64xf32>
    %14 = tpu.matmul %12, %13, %cst_10 {dimension_numbers = #tpu.dot_dimension_numbers<[1], [0], [0], [1], [0, 0, 1, 1], [], []>} : vector<32x64xbf16>, vector<64x64xbf16>, vector<32x64xf32> -> vector<32x64xf32>
    %c0_11 = arith.constant 0 : index
    %c0_12 = arith.constant 0 : index
    %15 = vector.load %arg6[%c0_11, %c0_12] : memref<1x64xf32, #tpu.memory_space<vmem>>, vector<1x64xf32>
    %16 = vector.broadcast %15 : vector<1x64xf32> to vector<32x64xf32>
    %17 = arith.addf %14, %16 : vector<32x64xf32>
    %cst_13 = arith.constant 0.000000e+00 : f32
    %18 = vector.broadcast %cst_13 : f32 to vector<32x64xf32>
    %19 = arith.maximumf %17, %18 : vector<32x64xf32>
    %20 = arith.truncf %19 : vector<32x64xf32> to vector<32x64xbf16>
    %c0_14 = arith.constant 0 : index
    %c0_15 = arith.constant 0 : index
    %21 = vector.load %arg7[%c0_14, %c0_15] : memref<64x128xbf16, #tpu.memory_space<vmem>>, vector<64x128xbf16>
    %cst_16 = arith.constant dense<0.000000e+00> : vector<32x128xf32>
    %22 = tpu.matmul %20, %21, %cst_16 {dimension_numbers = #tpu.dot_dimension_numbers<[1], [0], [0], [1], [0, 0, 1, 1], [], []>} : vector<32x64xbf16>, vector<64x128xbf16>, vector<32x128xf32> -> vector<32x128xf32>
    %c0_17 = arith.constant 0 : index
    %c0_18 = arith.constant 0 : index
    %23 = vector.load %arg8[%c0_17, %c0_18] : memref<1x128xf32, #tpu.memory_space<vmem>>, vector<1x128xf32>
    %24 = vector.broadcast %23 : vector<1x128xf32> to vector<32x128xf32>
    %25 = arith.addf %22, %24 : vector<32x128xf32>
    %cst_19 = arith.constant 0.000000e+00 : f32
    %26 = vector.broadcast %cst_19 : f32 to vector<32x128xf32>
    %27 = arith.maximumf %25, %26 : vector<32x128xf32>
    %28 = arith.truncf %27 : vector<32x128xf32> to vector<32x128xbf16>
    %c0_20 = arith.constant 0 : index
    %c0_21 = arith.constant 0 : index
    %29 = vector.load %arg9[%c0_20, %c0_21] : memref<128x1024xbf16, #tpu.memory_space<vmem>>, vector<128x1024xbf16>
    %cst_22 = arith.constant dense<0.000000e+00> : vector<32x1024xf32>
    %30 = tpu.matmul %28, %29, %cst_22 {dimension_numbers = #tpu.dot_dimension_numbers<[1], [0], [0], [1], [0, 0, 1, 1], [], []>} : vector<32x128xbf16>, vector<128x1024xbf16>, vector<32x1024xf32> -> vector<32x1024xf32>
    %c0_23 = arith.constant 0 : index
    %c0_24 = arith.constant 0 : index
    %31 = vector.load %arg10[%c0_23, %c0_24] : memref<1x1024xf32, #tpu.memory_space<vmem>>, vector<1x1024xf32>
    %32 = vector.broadcast %31 : vector<1x1024xf32> to vector<32x1024xf32>
    %33 = arith.addf %30, %32 : vector<32x1024xf32>
    %cst_25 = arith.constant dense<0xFF800000> : vector<1024xf32>
    %34 = vector.multi_reduction <maximumf>, %33, %cst_25 [0] : vector<32x1024xf32> to vector<1024xf32>
    %c0_26 = arith.constant 0 : index
    %c0_27 = arith.constant 0 : index
    %c0_28 = arith.constant 0 : index
    %35 = vector.load %arg11[%c0_26, %c0_27, %c0_28] : memref<1x1x1024xf32, #tpu.memory_space<vmem>>, vector<1x1x1024xf32>
    %36 = vector.shape_cast %34 : vector<1024xf32> to vector<1x1x1024xf32>
    %37 = arith.maximumf %35, %36 : vector<1x1x1024xf32>
    %c0_29 = arith.constant 0 : index
    %c0_30 = arith.constant 0 : index
    %c0_31 = arith.constant 0 : index
    %38 = vector.load %arg11[%c0_29, %c0_30, %c0_31] : memref<1x1x1024xf32, #tpu.memory_space<vmem>>, vector<1x1x1024xf32>
    tpu.vector_store %arg11[%c0_29, %c0_30, %c0_31], %37 {strides = array<i32>} : memref<1x1x1024xf32, #tpu.memory_space<vmem>>, vector<1x1x1024xf32>,
    return
  }
  func.func @transform_0(%arg0: i32, %arg1: i32) -> (i32, i32, i32) {
    %c0_i32 = arith.constant 0 : i32
    %c0_i32_0 = arith.constant 0 : i32
    return %arg0, %arg1, %c0_i32 : i32, i32, i32
  }
  func.func @transform_1(%arg0: i32, %arg1: i32) -> (i32, i32) {
    %c0_i32 = arith.constant 0 : i32
    %c0_i32_0 = arith.constant 0 : i32
    %c0_i32_1 = arith.constant 0 : i32
    return %c0_i32, %c0_i32_0 : i32, i32
  }
  func.func @transform_2(%arg0: i32, %arg1: i32) -> (i32, i32) {
    %c0_i32 = arith.constant 0 : i32
    %c0_i32_0 = arith.constant 0 : i32
    %c0_i32_1 = arith.constant 0 : i32
    return %c0_i32, %c0_i32_0 : i32, i32
  }
  func.func @transform_3(%arg0: i32, %arg1: i32) -> (i32, i32) {
    %c0_i32 = arith.constant 0 : i32
    %c0_i32_0 = arith.constant 0 : i32
    %c0_i32_1 = arith.constant 0 : i32
    return %c0_i32, %c0_i32_0 : i32, i32
  }
  func.func @transform_4(%arg0: i32, %arg1: i32) -> (i32, i32) {
    %c0_i32 = arith.constant 0 : i32
    %c0_i32_0 = arith.constant 0 : i32
    %c0_i32_1 = arith.constant 0 : i32
    return %c0_i32, %c0_i32_0 : i32, i32
  }
  func.func @transform_5(%arg0: i32, %arg1: i32) -> (i32, i32) {
    %c0_i32 = arith.constant 0 : i32
    %c0_i32_0 = arith.constant 0 : i32
    %c0_i32_1 = arith.constant 0 : i32
    return %c0_i32, %c0_i32_0 : i32, i32
  }
  func.func @transform_6(%arg0: i32, %arg1: i32) -> (i32, i32) {
    %c0_i32 = arith.constant 0 : i32
    %c0_i32_0 = arith.constant 0 : i32
    %c0_i32_1 = arith.constant 0 : i32
    return %c0_i32, %c0_i32_0 : i32, i32
  }
  func.func @transform_7(%arg0: i32, %arg1: i32) -> (i32, i32) {
    %c0_i32 = arith.constant 0 : i32
    %c0_i32_0 = arith.constant 0 : i32
    %c0_i32_1 = arith.constant 0 : i32
    return %c0_i32, %c0_i32_0 : i32, i32
  }
  func.func @transform_8(%arg0: i32, %arg1: i32) -> (i32, i32) {
    %c0_i32 = arith.constant 0 : i32
    %c0_i32_0 = arith.constant 0 : i32
    %c0_i32_1 = arith.constant 0 : i32
    return %c0_i32, %c0_i32_0 : i32, i32
  }
  func.func @transform_9(%arg0: i32, %arg1: i32) -> (i32, i32, i32) {
    %c0_i32 = arith.constant 0 : i32
    %c0_i32_0 = arith.constant 0 : i32
    %c0_i32_1 = arith.constant 0 : i32
    return %arg0, %c0_i32, %c0_i32_0 : i32, i32, i32
  }
}

module attributes {stable_mosaic.version = 11 : i64} {
  func.func @head_kernel(%arg0: memref<2x1024xf32, #tpu.memory_space<vmem>>, %arg1: memref<1024x512xbf16, #tpu.memory_space<vmem>>, %arg2: memref<1x512xf32, #tpu.memory_space<vmem>>, %arg3: memref<512x256xbf16, #tpu.memory_space<vmem>>, %arg4: memref<1x256xf32, #tpu.memory_space<vmem>>, %arg5: memref<256x40xbf16, #tpu.memory_space<vmem>>, %arg6: memref<1x40xf32, #tpu.memory_space<vmem>>, %arg7: memref<2x40xf32, #tpu.memory_space<vmem>>) attributes {dimension_semantics = [], scalar_prefetch = 0 : i64, scratch_operands = 0 : i64, tpu.core_type = #tpu.core_type<tc>} {
    %c0 = arith.constant 0 : index
    %c0_0 = arith.constant 0 : index
    %0 = vector.load %arg0[%c0, %c0_0] : memref<2x1024xf32, #tpu.memory_space<vmem>>, vector<2x1024xf32>
    %1 = arith.truncf %0 : vector<2x1024xf32> to vector<2x1024xbf16>
    %c0_1 = arith.constant 0 : index
    %c0_2 = arith.constant 0 : index
    %2 = vector.load %arg1[%c0_1, %c0_2] : memref<1024x512xbf16, #tpu.memory_space<vmem>>, vector<1024x512xbf16>
    %cst = arith.constant dense<0.000000e+00> : vector<2x512xf32>
    %3 = tpu.matmul %1, %2, %cst {dimension_numbers = #tpu.dot_dimension_numbers<[1], [0], [0], [1], [0, 0, 1, 1], [], []>} : vector<2x1024xbf16>, vector<1024x512xbf16>, vector<2x512xf32> -> vector<2x512xf32>
    %c0_3 = arith.constant 0 : index
    %c0_4 = arith.constant 0 : index
    %4 = vector.load %arg2[%c0_3, %c0_4] : memref<1x512xf32, #tpu.memory_space<vmem>>, vector<1x512xf32>
    %5 = vector.broadcast %4 : vector<1x512xf32> to vector<2x512xf32>
    %6 = arith.addf %3, %5 : vector<2x512xf32>
    %cst_5 = arith.constant 0.000000e+00 : f32
    %7 = vector.broadcast %cst_5 : f32 to vector<2x512xf32>
    %8 = arith.maximumf %6, %7 : vector<2x512xf32>
    %9 = arith.truncf %8 : vector<2x512xf32> to vector<2x512xbf16>
    %c0_6 = arith.constant 0 : index
    %c0_7 = arith.constant 0 : index
    %10 = vector.load %arg3[%c0_6, %c0_7] : memref<512x256xbf16, #tpu.memory_space<vmem>>, vector<512x256xbf16>
    %cst_8 = arith.constant dense<0.000000e+00> : vector<2x256xf32>
    %11 = tpu.matmul %9, %10, %cst_8 {dimension_numbers = #tpu.dot_dimension_numbers<[1], [0], [0], [1], [0, 0, 1, 1], [], []>} : vector<2x512xbf16>, vector<512x256xbf16>, vector<2x256xf32> -> vector<2x256xf32>
    %c0_9 = arith.constant 0 : index
    %c0_10 = arith.constant 0 : index
    %12 = vector.load %arg4[%c0_9, %c0_10] : memref<1x256xf32, #tpu.memory_space<vmem>>, vector<1x256xf32>
    %13 = vector.broadcast %12 : vector<1x256xf32> to vector<2x256xf32>
    %14 = arith.addf %11, %13 : vector<2x256xf32>
    %cst_11 = arith.constant 0.000000e+00 : f32
    %15 = vector.broadcast %cst_11 : f32 to vector<2x256xf32>
    %16 = arith.maximumf %14, %15 : vector<2x256xf32>
    %17 = arith.truncf %16 : vector<2x256xf32> to vector<2x256xbf16>
    %c0_12 = arith.constant 0 : index
    %c0_13 = arith.constant 0 : index
    %18 = vector.load %arg5[%c0_12, %c0_13] : memref<256x40xbf16, #tpu.memory_space<vmem>>, vector<256x40xbf16>
    %cst_14 = arith.constant dense<0.000000e+00> : vector<2x40xf32>
    %19 = tpu.matmul %17, %18, %cst_14 {dimension_numbers = #tpu.dot_dimension_numbers<[1], [0], [0], [1], [0, 0, 1, 1], [], []>} : vector<2x256xbf16>, vector<256x40xbf16>, vector<2x40xf32> -> vector<2x40xf32>
    %c0_15 = arith.constant 0 : index
    %c0_16 = arith.constant 0 : index
    %20 = vector.load %arg6[%c0_15, %c0_16] : memref<1x40xf32, #tpu.memory_space<vmem>>, vector<1x40xf32>
    %21 = vector.broadcast %20 : vector<1x40xf32> to vector<2x40xf32>
    %22 = arith.addf %19, %21 : vector<2x40xf32>
    %cst_17 = arith.constant dense<0xFF800000> : vector<2xf32>
    %23 = vector.multi_reduction <maximumf>, %22, %cst_17 [1] : vector<2x40xf32> to vector<2xf32>
    %24 = vector.shape_cast %23 : vector<2xf32> to vector<2x1xf32>
    %25 = vector.broadcast %24 : vector<2x1xf32> to vector<2x40xf32>
    %26 = arith.subf %22, %25 : vector<2x40xf32>
    %27 = math.exp %26 : vector<2x40xf32>
    %cst_18 = arith.constant dense<0.000000e+00> : vector<2xf32>
    %28 = vector.multi_reduction <add>, %27, %cst_18 [1] : vector<2x40xf32> to vector<2xf32>
    %29 = vector.shape_cast %28 : vector<2xf32> to vector<2x1xf32>
    %30 = math.log %29 : vector<2x1xf32>
    %31 = vector.broadcast %30 : vector<2x1xf32> to vector<2x40xf32>
    %32 = arith.subf %26, %31 : vector<2x40xf32>
    %c0_19 = arith.constant 0 : index
    %c0_20 = arith.constant 0 : index
    %33 = vector.load %arg7[%c0_19, %c0_20] : memref<2x40xf32, #tpu.memory_space<vmem>>, vector<2x40xf32>
    tpu.vector_store %arg7[%c0_19, %c0_20], %32 {strides = array<i32>} : memref<2x40xf32, #tpu.memory_space<vmem>>, vector<2x40xf32>,
    return
  }
}

</mosaic_0001>

<bundles_post_ra>
// kernel: pointnet_forward.2
= control target key start
LH: loop header
LB: loop body
LE: loop exit
PB: predicated region body
PF: predicated region fallthrough
CT: control target
= control target key end

     0   :  { %14 = vsyncpa [#allocation3], 0  ;;  %s1860_s30 = smov 0   ;;  %s1862_s10 = smov 0   ;;  %s2064_s0 = inlined_call_operand.vmem [shape: bf16[2,64,8], index: 0, kind: input, shape index: {}]   ;;  %s2065_s1 = inlined_call_operand.vmem [shape: bf16[8,64], index: 1, kind: input, shape index: {}]   ;;  %s2066_s2 = inlined_call_operand.vmem [shape: f32[1,64], index: 2, kind: input, shape index: {}]   ;;  %s2067_s3 = inlined_call_operand.vmem [shape: bf16[64,64], index: 3, kind: input, shape index: {}]   ;;  %s2068_s4 = inlined_call_operand.vmem [shape: f32[1,64], index: 4, kind: input, shape index: {}]   ;;  %s2069_s5 = inlined_call_operand.vmem [shape: bf16[64,128], index: 5, kind: input, shape index: {}]   ;;  %s2070_s6 = inlined_call_operand.vmem [shape: f32[1,128], index: 6, kind: input, shape index: {}]   ;;  %s2071_s7 = inlined_call_operand.hbm [shape: bf16[128,1024], index: 7, kind: input, shape index: {}]   ;;  %s2072_s8 = inlined_call_operand.vmem [shape: f32[1,1024], index: 8, kind: input, shape index: {}]   ;;  %s2073_s9 = inlined_call_operand.vmem [shape: f32[2,1,1024], index: 9, kind: output, shape index: {}]  }
   0x1   :  { %s1864_s11 = smov 0   ;;  %s1866_s12 = smov 0  }
   0x2   :  { %s1868_s13 = smov 0  }
   0x3 LB: > { %s1523_s14 = sadd.s32 4294967295, %s1802_s13   ;;  %s29_s15 = sadd.s32 1, %s1794_s11  ;;  %s1802_s13 = sphi %s1868_s13, %s20_s13   ;;  %s1798_s12 = sphi %s1866_s12, %s2085_s12   ;;  %s1794_s11 = sphi %s1864_s11, %s2084_s11   ;;  %s1790_s10 = sphi %s1862_s10, %s2083_s10   ;;  %s1786_s30 = sphi %s1860_s30, %s2082_s30  }
   0x4   : > { %p30_p0 = scmp.ge.s32.totalorder %s29_s15, 2  ;;  %s32_s16 = sadd.s32 1, %s1798_s12 }
   0x5   : > { %p1525_p1 = scmp.ge.s32.totalorder %s1802_s13, 1  ;;  %p259_p2 = scmp.lt.s32.totalorder %s1802_s13, 5 }
   0x6   : > { %s2087_s15 = smov (%p30_p0, %s29_s15), 0  ;;  %s2089_s16 = smov (!%p30_p0, %s32_s16), %s1798_s12 }
   0x7   : > { %p1893_p3 = pnand %p1525_p1, %p259_p2  ;;  %p34_p4 = scmp.ge.s32.totalorder %s2089_s16, 2 }
   0x8   : > { %p1897_p5 = scmp.eq.s32.totalorder %s1523_s14, 0  ;;  %s1804_s19 = smov [#allocation2]  }
   0x9   : > { %s2077_s17 = scalar_select %p1893_p3, 1, 0 }
   0xa   : > { %s2078_s18 = scalar_select %p1897_p5, 1, 0 }
   0xb   : > { %p1670_p6 = pneg %p1893_p3  ;;  %s2091_s16 = smov (%p34_p4, %s2089_s16), 0 }
   0xc   : > { %s289_s20 = sshll.u32 %s1804_s19, 4  ;;  %s1732_s24 = scalar_lea.hbm %s2071_s7, 8192  ;;  %s290_s20 = int_to_ptr.vmem [resolvable:$true] %s289_s20 }
   0xd   : > { %p1907_p7 = pnand %p1897_p5, %p1670_p6  ;;  %p1733_p8 = scmp.ne.s32.totalorder %s2071_s7, %s1732_s24 }
   0xe   : > { %p1739_p12 = scmp.lt.u32.totalorder %s1732_s24, %s2071_s7 }
   0xf   : > { %p1734_p9 = pneg %p1907_p7 }
  0x11   : > { %p1735_p10 = pnand %p1734_p9, %p1733_p8 }
  0x13   : > { %p1736_p11 = pneg %p1735_p10 }
  0x15   : > { %p1741_p13 = pnand %p1739_p12, %p1736_p11 }
  0x17   : > { %1744 = shalt.err (!%p1741_p13)
}
  0x18   : > { %s1745_s29 = scalar_lea.vmem %s290_s20, 8192  ;;  %p1753_p4 = scmp.lt.s32.totalorder %s290_s20, %s290_s20 }
  0x19   : > { %p1746_p0 = scmp.ne.s32.totalorder %s290_s20, %s1745_s29  ;;  %p1754_p6 = scmp.lt.s32.totalorder %s1745_s29, %s1745_s29 }
  0x1b   : > { %p1748_p1 = pnand %p1746_p0, %p1734_p9  ;;  %p1755_p5 = por %p1754_p6, %p1753_p4 }
  0x1d   : > { %p1749_p2 = pneg %p1748_p1 }
  0x1f   : > { %p1756_p3 = pnand %p1755_p5, %p1749_p2 }
  0x21   : > { %1759 = shalt.err (!%p1756_p3)
}
  0x22   : > { %s1805_s14 = smov 512   ;;  %s1806_s19 = smov 32  }
  0x23   : > { %1673 = dma.hbm_to_vmem [thread:$0]  (!%p1907_p7), %s2071_s7, 8192, %s290_s20, [#allocation3], %s1805_s14, %s1805_s14, %s1806_s19  }
  0x24   : > { %p2080_p8 = scmp.ne.s32.totalorder %s2077_s17, 0 }
  0x25   : > { %p2081_p10 = scmp.ne.s32.totalorder (!%p2080_p8), %s2078_s18, 0 }
  0x26   : > { %321 = sbr.rel (%p2080_p8) target bundleno = 1012 (0x3f4), region = 56 }
  0x2d   : > { %1781 = dma.done.wait (%p2081_p10), [#allocation3], 8192  }
  0x2e   : > { %1783 = vsyncadd (%p2081_p10), [#allocation3], 4294959104  ;;  %s1530_s24 = sshll.u32 %s1786_s30, 2  ;;  %p361_p3 = scmp.lt.s32.totalorder %s1790_s10, 1 }
  0x2f   : > { %p363_p5 = scmp.lt.s32.totalorder %s1530_s24, 7  ;;  %p1534_p7 = scmp.ne.s32.totalorder %s1786_s30, 0 }
  0x30   : > { %s2093_s10 = smov (!%p361_p3, %s1790_s10), 1  ;;  %v1807_v0 = vmov (!%p1534_p7), -inf  }
  0x31   : > { %s2095_s24 = smov (!%p363_p5, %s1530_s24), 7  ;;  %s1531_s21 = sshll.u32 %s2093_s10, 3 }
  0x32   : > { %s366_s25 = sadd.s32 %s1531_s21, %s2095_s24  ;;  %s1939_s17 = scalar_lea.vmem %s2073_s9, %s1531_s21 }
  0x33   : > { %s1532_s27 = sshll.u32 %s366_s25, 2  ;;  %378 = sbr.rel (%p1534_p7) target bundleno = 58 (0x3a), region = 64  ;;  %379 = vst [vmem:[%s1939_s17] sm:$0xff] (!%p1534_p7), %v1807_v0 }
  0x34   : > { %s368_s18 = scalar_lea.vmem %s2064_s0, %s1532_s27 }
  0x3a PF: > { %v384_v1 = vld [vmem:[%s2065_s1] sm:$0xf]  ;;  %vm409_vm0 = vcmask 1043456   ;;  %vm402_vm1 = vcmask 64512   ;;  %v1723_v4 = vld [vmem:[%s368_s18 + $0x8] sm:$0xff]   ;;  %v1726_v7 = vld [vmem:[%s2067_s3 + $0x10] sm:$0xff]  }
  0x3b   : > { %v1722_v2 = vld [vmem:[%s368_s18] sm:$0xff]   ;;  %1665 = vmatprep.subr.msk.bf16.mxu0 %vm409_vm0, %v384_v1  ;;  %v411_v3 = vsel %vm409_vm0, %v384_v1, 0  ;;  %v1725_v6 = vld [vmem:[%s2067_s3 + $0x8] sm:$0xff]   ;;  %v1727_v8 = vld [vmem:[%s2067_s3 + $0x18] sm:$0xff]   ;;  %vm507_vm2 = vcmask 523264  }
  0x3c   : > { %1636 = vmatpush3.bf16.msra.mxu0 %v411_v3  ;;  %1637 = vmatprep.mubr.msk.bf16.mxu0 %vm402_vm1, %v1722_v2  ;;  %v1724_v5 = vld [vmem:[%s2067_s3] sm:$0xff]   ;;  %v1729_v10 = vld [vmem:[%s2069_s5 + $0x8] sm:$0xff]   ;;  %v1730_v26 = vld [vmem:[%s2069_s5 + $0x10] sm:$0xff]  }
  0x3d   : > { %1641 = vmatprep.subr.bf16.mxu1 %v1724_v5  ;;  %v1728_v9 = vld [vmem:[%s2069_s5] sm:$0xff]   ;;  %v1731_v27 = vld [vmem:[%s2069_s5 + $0x18] sm:$0xff]   ;;  %v670_v30 = vld [vmem:[#allocation2 + $0x8] sm:$0xff] }
  0x3e   : > { %1642 = vmatpush3.bf16.msra.mxu1 %v1724_v5  ;;  %1653 = vmatprep.subr.bf16.mxu0 %v1728_v9  ;;  %v1535_v11 = vld [vmem:[%s2066_s2] ss:$0 sm:$0xff]  ;;  %v674_v33 = vld [vmem:[#allocation2 + $0x28] sm:$0xff] }
  0x3f   : > { %1638 = vmatmul.mubr.msk.bf16.vlgmr.msra.gmra.mrb[0].mxu0 %vm402_vm1, %v1723_v4  ;;  %1643 = vmatprep.subr.bf16.mxu1 %v1725_v6  ;;  %v669_v28 = vld [vmem:[#allocation2] sm:$0xff]  ;;  %v1556_v36 = vcombine.low %v670_v30, %v674_v33  ;;  %v1557_v37 = vcombine.high %v670_v30, %v674_v33  ;;  %v678_v5 = vld [vmem:[#allocation2 + $0x48] sm:$0xff] }
  0x40   : > { %1654 = vmatpush3.bf16.msra.mxu0 %v1728_v9  ;;  %v673_v29 = vld [vmem:[#allocation2 + $0x20] sm:$0xff] }
  0x41   : > { %1655 = vmatprep.subr.bf16.mxu0 %v1729_v10  ;;  %v1554_v31 = vcombine.low %v669_v28, %v673_v29  ;;  %v1555_v32 = vcombine.high %v669_v28, %v673_v29  ;;  %v677_v34 = vld [vmem:[#allocation2 + $0x40] sm:$0xff]  ;;  %v718_v29 = vld [vmem:[#allocation2 + $0x188] sm:$0xff] }
  0x42   : > { %1644 = vmatpush3.bf16.msra.mxu1 %v1725_v6  ;;  %v681_v35 = vld [vmem:[#allocation2 + $0x60] sm:$0xff]  ;;  %v682_v6 = vld [vmem:[#allocation2 + $0x68] sm:$0xff] }
  0x43   : > { %1645 = vmatprep.subr.bf16.mxu1 %v1726_v7  ;;  %v1563_v38 = vcombine.high %v677_v34, %v681_v35  ;;  %v1562_v39 = vcombine.low %v677_v34, %v681_v35  ;;  %v685_v40 = vld [vmem:[#allocation2 + $0x80] sm:$0xff]  ;;  %v1565_v9 = vcombine.high %v678_v5, %v682_v6 }
  0x44   : > { %1656 = vmatpush3.bf16.msra.mxu0 %v1729_v10  ;;  %v689_v41 = vld [vmem:[#allocation2 + $0xa0] sm:$0xff]  ;;  %v686_v10 = vld [vmem:[#allocation2 + $0x88] sm:$0xff] }
  0x45   : > { %1657 = vmatprep.subr.bf16.mxu0 %v1730_v26  ;;  %v1571_v42 = vcombine.high %v685_v40, %v689_v41  ;;  %v1570_v43 = vcombine.low %v685_v40, %v689_v41  ;;  %v693_v44 = vld [vmem:[#allocation2 + $0xc0] sm:$0xff] }
  0x46   : > { %1646 = vmatpush3.bf16.msra.mxu1 %v1726_v7  ;;  %v697_v45 = vld [vmem:[#allocation2 + $0xe0] sm:$0xff] }
  0x47   : > { %1647 = vmatprep.subr.bf16.mxu1 %v1727_v8  ;;  %v1579_v46 = vcombine.high %v693_v44, %v697_v45  ;;  %v1578_v47 = vcombine.low %v693_v44, %v697_v45  ;;  %v701_v48 = vld [vmem:[#allocation2 + $0x100] sm:$0xff]  ;;  %v675_v44 = vld [vmem:[#allocation2 + $0x30] sm:$0xff]  ;;  %v672_v45 = vld [vmem:[#allocation2 + $0x18] sm:$0xff] }
  0x48   : > { %1658 = vmatpush3.bf16.msra.mxu0 %v1730_v26  ;;  %v705_v49 = vld [vmem:[#allocation2 + $0x120] sm:$0xff] }
  0x49   : > { %1659 = vmatprep.subr.bf16.mxu0 %v1731_v27  ;;  %v1587_v50 = vcombine.high %v701_v48, %v705_v49  ;;  %v1586_v51 = vcombine.low %v701_v48, %v705_v49  ;;  %v709_v52 = vld [vmem:[#allocation2 + $0x140] sm:$0xff] }
  0x4a   : > { %1648 = vmatpush3.bf16.msra.mxu1 %v1727_v8  ;;  %v713_v53 = vld [vmem:[#allocation2 + $0x160] sm:$0xff] }
  0x4b   : > { %1095 = vmatprep.subr.bf16.mxu1 %v1555_v32  ;;  %v1595_v54 = vcombine.high %v709_v52, %v713_v53  ;;  %v1594_v55 = vcombine.low %v709_v52, %v713_v53  ;;  %v1540_v56 = vld [vmem:[%s2068_s4] ss:$0 sm:$0xff] }
  0x4c   : > { %1660 = vmatpush3.bf16.msra.mxu0 %v1731_v27  ;;  %v717_v27 = vld [vmem:[#allocation2 + $0x180] sm:$0xff] }
  0x4d   : > { %1148 = vmatprep.subr.bf16.mxu0 %v1557_v37  ;;  %v721_v28 = vld [vmem:[#allocation2 + $0x1a0] sm:$0xff]  ;;  %v726_v37 = vld [vmem:[#allocation2 + $0x1c8] sm:$0xff] }
  0x4e   : > { %v1603_v30 = vcombine.high %v717_v27, %v721_v28  ;;  %v1602_v32 = vcombine.low %v717_v27, %v721_v28  ;;  %v725_v35 = vld [vmem:[#allocation2 + $0x1c0] sm:$0xff]  ;;  %v704_v27 = vld [vmem:[#allocation2 + $0x118] sm:$0xff] }
  0x4f   : > { %v1547_v52 = vld [vmem:[%s2070_s6] ss:$0 sm:$0xff]  ;;  %v708_v28 = vld [vmem:[#allocation2 + $0x138] sm:$0xff] }
 0x112   : > { %v1639_v12 = vpop.f32.mrb[0].mxu0 }
 0x113   : > { %v456_v13 = vadd.f32 %v1639_v12, %v1535_v11  ;;  %v447_v14 = vpop.f32.mrb[1].mxu0  ;;  %v1564_v12 = vcombine.low %v678_v5, %v682_v6 }
 0x114   : > { %v448_v15 = vadd.f32 %v1535_v11, %v447_v14  ;;  %v1640_v16 = vpop.f32.mrb[2].mxu0  ;;  %v694_v14 = vld [vmem:[#allocation2 + $0xc8] sm:$0xff] }
 0x115   : > { %v459_v17 = vadd.f32 %v1640_v16, %v1535_v11  ;;  %v450_v18 = vpop.f32.mrb[3].mxu0  ;;  %v464_v20 = vmax.f32 %v456_v13, 0.0 }
 0x116   : > { %v451_v19 = vadd.f32 %v1535_v11, %v450_v18  ;;  %v462_v22 = vmax.f32 %v448_v15, 0.0  ;;  %v690_v11 = vld [vmem:[#allocation2 + $0xa8] sm:$0xff] }
 0x117   : > { %v465_v21 = vmax.f32 %v459_v17, 0.0  ;;  %v1573_v13 = vcombine.high %v686_v10, %v690_v11  ;;  %v698_v15 = vld [vmem:[#allocation2 + $0xe8] sm:$0xff]  ;;  %v1572_v16 = vcombine.low %v686_v10, %v690_v11  ;;  %v691_v10 = vld [vmem:[#allocation2 + $0xb0] sm:$0xff]  ;;  %v688_v11 = vld [vmem:[#allocation2 + $0x98] sm:$0xff] }
 0x118   : > { %v463_v23 = vmax.f32 %v451_v19, 0.0  ;;  %v1581_v17 = vcombine.high %v694_v14, %v698_v15  ;;  %v702_v18 = vld [vmem:[#allocation2 + $0x108] sm:$0xff] }
 0x119   : > { %v467_v24 = vpack.c.bf16 %v465_v21, %v464_v20  ;;  %v706_v19 = vld [vmem:[#allocation2 + $0x128] sm:$0xff]  ;;  %v1580_v20 = vcombine.low %v694_v14, %v698_v15 }
 0x11a   : > { %v466_v25 = vpack.c.bf16 %v463_v23, %v462_v22  ;;  %v1589_v21 = vcombine.high %v702_v18, %v706_v19  ;;  %v710_v22 = vld [vmem:[#allocation2 + $0x148] sm:$0xff] }
 0x11b   : > { %v714_v23 = vld [vmem:[#allocation2 + $0x168] sm:$0xff] }
 0x11c   : > { %1649 = vmatprep.mubr.msk.bf16.mxu1 %vm507_vm2, %v466_v25  ;;  %v1597_v25 = vcombine.high %v710_v22, %v714_v23  ;;  %v1596_v26 = vcombine.low %v710_v22, %v714_v23 }
 0x11d   : > { %1650 = vmatmul.mubr.msk.bf16.vlgmr.msra.gmra.mrb[0].mxu1 %vm507_vm2, %v467_v24  ;;  %v1588_v24 = vcombine.low %v702_v18, %v706_v19  ;;  %v699_v18 = vld [vmem:[#allocation2 + $0xf0] sm:$0xff]  ;;  %v696_v19 = vld [vmem:[#allocation2 + $0xd8] sm:$0xff] }
 0x11e   : > { %1096 = vmatpush1.bf16.msra.mxu1 %v1554_v31  ;;  %v722_v31 = vld [vmem:[#allocation2 + $0x1a8] sm:$0xff] }
 0x11f   : > { %1097 = vmatprep.subr.bf16.mxu1 %v1563_v38  ;;  %v1604_v33 = vcombine.low %v718_v29, %v722_v31  ;;  %v1605_v34 = vcombine.high %v718_v29, %v722_v31 }
 0x122   : > { %1098 = vmatpush1.bf16.msra.mxu1 %v1562_v39  ;;  %v730_v39 = vld [vmem:[#allocation2 + $0x1e8] sm:$0xff] }
 0x123   : > { %1099 = vmatprep.subr.bf16.mxu1 %v1571_v42  ;;  %v1612_v41 = vcombine.low %v726_v37, %v730_v39  ;;  %v1613_v42 = vcombine.high %v726_v37, %v730_v39 }
 0x126   : > { %1100 = vmatpush1.bf16.msra.mxu1 %v1570_v43  ;;  %v671_v43 = vld [vmem:[#allocation2 + $0x10] sm:$0xff] }
 0x127   : > { %1101 = vmatprep.subr.bf16.mxu1 %v1579_v46  ;;  %v1559_v46 = vcombine.high %v671_v43, %v675_v44  ;;  %v1558_v48 = vcombine.low %v671_v43, %v675_v44  ;;  %v720_v43 = vld [vmem:[#allocation2 + $0x198] sm:$0xff] }
 0x128   : > { %v724_v44 = vld [vmem:[#allocation2 + $0x1b8] sm:$0xff] }
 0x12a   : > { %1102 = vmatpush1.bf16.msra.mxu1 %v1578_v47  ;;  %v676_v47 = vld [vmem:[#allocation2 + $0x38] sm:$0xff] }
 0x12b   : > { %1103 = vmatprep.subr.bf16.mxu1 %v1587_v50  ;;  %v1560_v49 = vcombine.low %v672_v45, %v676_v47  ;;  %v1561_v50 = vcombine.high %v672_v45, %v676_v47 }
 0x12e   : > { %1104 = vmatpush1.bf16.msra.mxu1 %v1586_v51  ;;  %v1808_v51 = vmov 0  }
 0x12f   : > { %1105 = vmatprep.subr.bf16.mxu1 %v1595_v54  ;;  %1127 = vmatprep.mubr.bf16.mxu1 %v1808_v51 }
 0x132   : > { %1106 = vmatpush1.bf16.msra.mxu1 %v1594_v55 }
 0x133   : > { %1107 = vmatprep.subr.bf16.mxu1 %v1603_v30 }
 0x136   : > { %1108 = vmatpush1.bf16.msra.mxu1 %v1602_v32  ;;  %v1593_v32 = vcombine.high %v704_v27, %v708_v28 }
 0x1f0   : > { %v1651_v57 = vpop.f32.mrb[0].mxu1 }
 0x1f1   : > { %v557_v58 = vadd.f32 %v1651_v57, %v1540_v56  ;;  %v548_v59 = vpop.f32.mrb[1].mxu1 }
 0x1f2   : > { %v549_v60 = vadd.f32 %v1540_v56, %v548_v59  ;;  %v1652_v61 = vpop.f32.mrb[2].mxu1 }
 0x1f3   : > { %v560_v62 = vadd.f32 %v1652_v61, %v1540_v56  ;;  %v551_v63 = vpop.f32.mrb[3].mxu1  ;;  %v565_v1 = vmax.f32 %v557_v58, 0.0  ;;  %v679_v61 = vld [vmem:[#allocation2 + $0x50] sm:$0xff] }
 0x1f4   : > { %v552_v0 = vadd.f32 %v1540_v56, %v551_v63  ;;  %v563_v3 = vmax.f32 %v549_v60, 0.0 }
 0x1f5   : > { %v566_v2 = vmax.f32 %v560_v62, 0.0 }
 0x1f6   : > { %v564_v4 = vmax.f32 %v552_v0, 0.0  ;;  %v683_v0 = vld [vmem:[#allocation2 + $0x70] sm:$0xff] }
 0x1f7   : > { %v568_v7 = vpack.c.bf16 %v566_v2, %v565_v1  ;;  %v680_v1 = vld [vmem:[#allocation2 + $0x58] sm:$0xff] }
 0x1f8   : > { %v567_v8 = vpack.c.bf16 %v564_v4, %v563_v3  ;;  %v684_v2 = vld [vmem:[#allocation2 + $0x78] sm:$0xff] }
 0x1f9   : > { %v1568_v14 = vcombine.low %v680_v1, %v684_v2 }
 0x1fa   : > { %1661 = vmatprep.mubr.msk.bf16.mxu0 %vm507_vm2, %v567_v8  ;;  %v1569_v8 = vcombine.high %v680_v1, %v684_v2 }
 0x1fb   : > { %1662 = vmatmul.mubr.msk.bf16.vlgmr.msra.gmra.mrb[4].mxu0 %vm507_vm2, %v568_v7  ;;  %v1567_v7 = vcombine.high %v679_v61, %v683_v0 }
 0x1fc   : > { %1149 = vmatpush1.bf16.msra.mxu0 %v1556_v36  ;;  %v729_v36 = vld [vmem:[#allocation2 + $0x1e0] sm:$0xff]  ;;  %1180 = vmatprep.mubr.bf16.mxu0 %v1808_v51 }
 0x1fd   : > { %1150 = vmatprep.subr.bf16.mxu0 %v1565_v9  ;;  %v1611_v38 = vcombine.high %v725_v35, %v729_v36  ;;  %v1610_v40 = vcombine.low %v725_v35, %v729_v36  ;;  %v687_v9 = vld [vmem:[#allocation2 + $0x90] sm:$0xff]  ;;  %v712_v35 = vld [vmem:[#allocation2 + $0x158] sm:$0xff] }
 0x1fe   : > { %v1575_v15 = vcombine.high %v687_v9, %v691_v10  ;;  %v716_v36 = vld [vmem:[#allocation2 + $0x178] sm:$0xff] }
 0x1ff   : > { %1109 = vmatprep.subr.bf16.mxu1 %v1611_v38  ;;  %v1592_v38 = vcombine.low %v704_v27, %v708_v28 }
 0x200   : > { %1151 = vmatpush1.bf16.msra.mxu0 %v1564_v12  ;;  %1110 = vmatpush1.bf16.msra.mxu1 %v1610_v40  ;;  %v692_v12 = vld [vmem:[#allocation2 + $0xb8] sm:$0xff]  ;;  %v1601_v40 = vcombine.high %v712_v35, %v716_v36 }
 0x201   : > { %1152 = vmatprep.subr.bf16.mxu0 %v1573_v13  ;;  %1201 = vmatprep.subr.bf16.mxu1 %v1559_v46  ;;  %v1566_v13 = vcombine.low %v679_v61, %v683_v0  ;;  %v1576_v22 = vcombine.low %v688_v11, %v692_v12  ;;  %v1600_v46 = vcombine.low %v712_v35, %v716_v36  ;;  %v2013_v0 = vld [vmem:[%s2072_s8] sm:$0xff] }
 0x204   : > { %1153 = vmatpush1.bf16.msra.mxu0 %v1572_v16  ;;  %v1577_v16 = vcombine.high %v688_v11, %v692_v12 }
 0x205   : > { %1154 = vmatprep.subr.bf16.mxu0 %v1581_v17  ;;  %v695_v17 = vld [vmem:[#allocation2 + $0xd0] sm:$0xff] }
 0x206   : > { %v1583_v23 = vcombine.high %v695_v17, %v699_v18  ;;  %v1582_v29 = vcombine.low %v695_v17, %v699_v18 }
 0x208   : > { %1155 = vmatpush1.bf16.msra.mxu0 %v1580_v20  ;;  %v700_v20 = vld [vmem:[#allocation2 + $0xf8] sm:$0xff] }
 0x209   : > { %1156 = vmatprep.subr.bf16.mxu0 %v1589_v21  ;;  %v1574_v21 = vcombine.low %v687_v9, %v691_v10  ;;  %v1584_v30 = vcombine.low %v696_v19, %v700_v20 }
 0x20c   : > { %1157 = vmatpush1.bf16.msra.mxu0 %v1588_v24  ;;  %v1585_v24 = vcombine.high %v696_v19, %v700_v20 }
 0x20d   : > { %1158 = vmatprep.subr.bf16.mxu0 %v1597_v25  ;;  %v703_v25 = vld [vmem:[#allocation2 + $0x110] sm:$0xff] }
 0x210   : > { %1159 = vmatpush1.bf16.msra.mxu0 %v1596_v26  ;;  %v707_v26 = vld [vmem:[#allocation2 + $0x130] sm:$0xff] }
 0x211   : > { %1160 = vmatprep.subr.bf16.mxu0 %v1605_v34  ;;  %v1591_v31 = vcombine.high %v703_v25, %v707_v26  ;;  %v715_v34 = vld [vmem:[#allocation2 + $0x170] sm:$0xff]  ;;  %v1590_v37 = vcombine.low %v703_v25, %v707_v26 }
 0x214   : > { %1161 = vmatpush1.bf16.msra.mxu0 %v1604_v33  ;;  %v711_v33 = vld [vmem:[#allocation2 + $0x150] sm:$0xff] }
 0x215   : > { %1162 = vmatprep.subr.bf16.mxu0 %v1613_v42  ;;  %v1599_v39 = vcombine.high %v711_v33, %v715_v34  ;;  %v723_v42 = vld [vmem:[#allocation2 + $0x1b0] sm:$0xff]  ;;  %v1598_v45 = vcombine.low %v711_v33, %v715_v34 }
 0x218   : > { %1163 = vmatpush1.bf16.msra.mxu0 %v1612_v41  ;;  %v719_v41 = vld [vmem:[#allocation2 + $0x190] sm:$0xff] }
 0x219   : > { %1254 = vmatprep.subr.bf16.mxu0 %v1561_v50  ;;  %v1607_v47 = vcombine.high %v719_v41, %v723_v42  ;;  %v731_v50 = vld [vmem:[#allocation2 + $0x1f0] sm:$0xff] }
 0x2ce   : > { %v1663_v53 = vpop.f32.mrb[4].mxu0 }
 0x2cf   : > { %v657_v54 = vadd.f32 %v1663_v53, %v1547_v52  ;;  %v648_v55 = vpop.f32.mrb[5].mxu0  ;;  %v732_v53 = vld [vmem:[#allocation2 + $0x1f8] sm:$0xff] }
 0x2d0   : > { %v649_v56 = vadd.f32 %v1547_v52, %v648_v55  ;;  %v1664_v57 = vpop.f32.mrb[6].mxu0  ;;  %v1608_v55 = vcombine.low %v720_v43, %v724_v44 }
 0x2d1   : > { %v660_v58 = vadd.f32 %v1664_v57, %v1547_v52  ;;  %v651_v59 = vpop.f32.mrb[7].mxu0  ;;  %v665_v62 = vmax.f32 %v657_v54, 0.0  ;;  %v1606_v54 = vcombine.low %v719_v41, %v723_v42 }
 0x2d2   : > { %v652_v60 = vadd.f32 %v1547_v52, %v651_v59  ;;  %v663_v3 = vmax.f32 %v649_v56, 0.0  ;;  %v728_v52 = vld [vmem:[#allocation2 + $0x1d8] sm:$0xff] }
 0x2d3   : > { %v666_v63 = vmax.f32 %v660_v58, 0.0  ;;  %v1617_v57 = vcombine.high %v728_v52, %v732_v53  ;;  %v1616_v59 = vcombine.low %v728_v52, %v732_v53 }
 0x2d4   : > { %v664_v4 = vmax.f32 %v652_v60, 0.0  ;;  %v735_v60 = vlaneseq }
 0x2d5   : > { %v1988_v5 = vpack.c.bf16 %v666_v63, %v665_v62 }
 0x2d6   : > { %v1990_v6 = vpack.c.bf16 %v664_v4, %v663_v3  ;;  %v2006_v61 = vshrl.u32 %v735_v60, 7 }
 0x2d8   : > { %1128 = vmatmul.mubr.bf16.vlgmr.msra.gmra.mrb[4].mxu1 %v1990_v6  ;;  %1181 = vmatmul.mubr.bf16.vlgmr.msra.gmra.mrb[8].mxu0 %v1990_v6  ;;  %v737_v62 = vsub.s32 0, %v2006_v61  ;;  %v745_v63 = vsub.s32 2, %v2006_v61  ;;  %v741_v1 = vsub.s32 1, %v2006_v61 }
 0x2d9   : > { %1202 = vmatpush1.bf16.msra.mxu1 %v1558_v48  ;;  %1255 = vmatpush1.bf16.msra.mxu0 %v1560_v49  ;;  %v1609_v48 = vcombine.high %v720_v43, %v724_v44  ;;  %v727_v49 = vld [vmem:[#allocation2 + $0x1d0] sm:$0xff] }
 0x2da   : > { %1203 = vmatprep.subr.bf16.mxu1 %v1567_v7  ;;  %1256 = vmatprep.subr.bf16.mxu0 %v1569_v8  ;;  %v1615_v56 = vcombine.high %v727_v49, %v731_v50  ;;  %v1614_v58 = vcombine.low %v727_v49, %v731_v50  ;;  %v738_v2 = vrot.slane %v2013_v0, %v737_v62 }
 0x2db   : > { %1137 = vmatprep.mubr.bf16.mxu1 %v1808_v51  ;;  %1190 = vmatprep.mubr.bf16.mxu0 %v1808_v51  ;;  %v746_v3 = vrot.slane %v2013_v0, %v745_v63 }
 0x2dd   : > { %1204 = vmatpush1.bf16.msra.mxu1 %v1566_v13  ;;  %1257 = vmatpush1.bf16.msra.mxu0 %v1568_v14 }
 0x2de   : > { %1205 = vmatprep.subr.bf16.mxu1 %v1575_v15  ;;  %1258 = vmatprep.subr.bf16.mxu0 %v1577_v16 }
 0x2e0   : > { %1138 = vmatmul.mubr.bf16.gmra.mrb[8].mxu1 %v1988_v5  ;;  %1191 = vmatmul.mubr.bf16.gmra.mrb[12].mxu0 %v1988_v5 }
 0x2e1   : > { %1206 = vmatpush1.bf16.msra.mxu1 %v1574_v21  ;;  %1259 = vmatpush1.bf16.msra.mxu0 %v1576_v22 }
 0x2e2   : > { %1207 = vmatprep.subr.bf16.mxu1 %v1583_v23  ;;  %1260 = vmatprep.subr.bf16.mxu0 %v1585_v24 }
 0x2e3   : > { %1233 = vmatprep.mubr.bf16.mxu1 %v1808_v51  ;;  %1286 = vmatprep.mubr.bf16.mxu0 %v1808_v51 }
 0x2e5   : > { %1208 = vmatpush1.bf16.msra.mxu1 %v1582_v29  ;;  %1261 = vmatpush1.bf16.msra.mxu0 %v1584_v30 }
 0x2e6   : > { %1209 = vmatprep.subr.bf16.mxu1 %v1591_v31  ;;  %1262 = vmatprep.subr.bf16.mxu0 %v1593_v32 }
 0x2e9   : > { %1210 = vmatpush1.bf16.msra.mxu1 %v1590_v37  ;;  %1263 = vmatpush1.bf16.msra.mxu0 %v1592_v38 }
 0x2ea   : > { %1211 = vmatprep.subr.bf16.mxu1 %v1599_v39  ;;  %1264 = vmatprep.subr.bf16.mxu0 %v1601_v40 }
 0x2ed   : > { %1212 = vmatpush1.bf16.msra.mxu1 %v1598_v45  ;;  %1265 = vmatpush1.bf16.msra.mxu0 %v1600_v46 }
 0x2ee   : > { %1213 = vmatprep.subr.bf16.mxu1 %v1607_v47  ;;  %1266 = vmatprep.subr.bf16.mxu0 %v1609_v48 }
 0x2f1   : > { %1214 = vmatpush1.bf16.msra.mxu1 %v1606_v54  ;;  %1267 = vmatpush1.bf16.msra.mxu0 %v1608_v55 }
 0x2f2   : > { %1215 = vmatprep.subr.bf16.mxu1 %v1615_v56  ;;  %1268 = vmatprep.subr.bf16.mxu0 %v1617_v57 }
 0x2f5   : > { %1216 = vmatpush1.bf16.msra.mxu1 %v1614_v58  ;;  %1269 = vmatpush1.bf16.msra.mxu0 %v1616_v59  ;;  %v1809_v58 = vmov 1966171168  }
 0x2f6   : > { %v1393_v59 = vunpack.c.l.s4 %v1809_v58 }
 0x2f8   : > { %1234 = vmatmul.mubr.bf16.vlgmr.msra.gmra.mrb[12].mxu1 %v1990_v6  ;;  %1287 = vmatmul.mubr.bf16.vlgmr.msra.gmra.mrb[16].mxu0 %v1990_v6  ;;  %v742_v6 = vrot.slane %v2013_v0, %v741_v1 }
 0x2f9   : > { %1243 = vmatprep.mubr.bf16.mxu1 %v1808_v51  ;;  %1296 = vmatprep.mubr.bf16.mxu0 %v1808_v51  ;;  %v749_v51 = vsub.s32 3, %v2006_v61 }
 0x2fb   : > { %v750_v7 = vrot.slane %v2013_v0, %v749_v51 }
 0x300   : > { %1244 = vmatmul.mubr.bf16.gmra.mrb[16].mxu1 %v1988_v5  ;;  %1297 = vmatmul.mubr.bf16.gmra.mrb[20].mxu0 %v1988_v5 }
 0x3ab   : > { %v1129_v4 = vpop.f32.mrb[4].mxu1  ;;  %v1182_v5 = vpop.f32.mrb[8].mxu0 }
 0x3ac   : > { %v1131_v8 = vpop.f32.mrb[5].mxu1  ;;  %v1184_v9 = vpop.f32.mrb[9].mxu0  ;;  %v1130_v12 = vadd.f32 %v1129_v4, %v738_v2  ;;  %v1183_v13 = vadd.f32 %v1182_v5, %v746_v3  ;;  %v1394_v5 = vunpack.c.0.s8 %v1393_v59 }
 0x3ad   : > { %v1133_v10 = vpop.f32.mrb[6].mxu1  ;;  %v1186_v11 = vpop.f32.mrb[10].mxu0  ;;  %v1132_v18 = vadd.f32 %v1131_v8, %v742_v6  ;;  %v1185_v19 = vadd.f32 %v1184_v9, %v750_v7 }
 0x3ae   : > { %v1134_v14 = vadd.f32 %v1133_v10, %v738_v2  ;;  %v1187_v15 = vadd.f32 %v1186_v11, %v746_v3  ;;  %v1135_v16 = vpop.f32.mrb[7].mxu1  ;;  %v1188_v17 = vpop.f32.mrb[11].mxu0 }
 0x3af   : > { %v1136_v20 = vadd.f32 %v1135_v16, %v742_v6  ;;  %v1189_v21 = vadd.f32 %v1188_v17, %v750_v7  ;;  %v753_v16 = vsub.s32 4, %v2006_v61  ;;  %v761_v17 = vsub.s32 6, %v2006_v61 }
 0x3b0   : > { %v1307_v22 = vmax.f32 %v1130_v12, %v1134_v14  ;;  %v1325_v23 = vmax.f32 %v1183_v13, %v1187_v15  ;;  %v2022_v14 = vsub.s32 %v1394_v5, %v2006_v61 }
 0x3b1   : > { %v1316_v24 = vmax.f32 %v1132_v18, %v1136_v20  ;;  %v1334_v25 = vmax.f32 %v1185_v19, %v1189_v21  ;;  %v757_v20 = vsub.s32 5, %v2006_v61  ;;  %v765_v21 = vsub.s32 7, %v2006_v61 }
 0x3b3   : > { %v1139_v26 = vpop.f32.mrb[8].mxu1  ;;  %v1192_v27 = vpop.f32.mrb[12].mxu0 }
 0x3b4   : > { %v1140_v28 = vadd.f32 %v1139_v26, %v738_v2  ;;  %v1193_v29 = vadd.f32 %v1192_v27, %v746_v3  ;;  %v1141_v30 = vpop.f32.mrb[9].mxu1  ;;  %v1194_v31 = vpop.f32.mrb[13].mxu0 }
 0x3b5   : > { %v1142_v32 = vadd.f32 %v1141_v30, %v742_v6  ;;  %v1195_v33 = vadd.f32 %v1194_v31, %v750_v7  ;;  %v1143_v34 = vpop.f32.mrb[10].mxu1  ;;  %v1196_v35 = vpop.f32.mrb[14].mxu0  ;;  %v766_v30 = vrot.slane %v2013_v0, %v765_v21 }
 0x3b6   : > { %v1308_v36 = vmax.f32 %v1307_v22, %v1140_v28  ;;  %v1326_v37 = vmax.f32 %v1325_v23, %v1193_v29  ;;  %v1144_v38 = vadd.f32 %v1143_v34, %v738_v2  ;;  %v1197_v39 = vadd.f32 %v1196_v35, %v746_v3  ;;  %v1145_v40 = vpop.f32.mrb[11].mxu1  ;;  %v1198_v41 = vpop.f32.mrb[15].mxu0 }
 0x3b7   : > { %v1317_v42 = vmax.f32 %v1316_v24, %v1142_v32  ;;  %v1335_v43 = vmax.f32 %v1334_v25, %v1195_v33  ;;  %v1146_v44 = vadd.f32 %v1145_v40, %v742_v6  ;;  %v1199_v45 = vadd.f32 %v1198_v41, %v750_v7 }
 0x3b8   : > { %v1309_v46 = vmax.f32 %v1308_v36, %v1144_v38  ;;  %v1327_v47 = vmax.f32 %v1326_v37, %v1197_v39  ;;  %v754_v24 = vrot.slane %v2013_v0, %v753_v16  ;;  %v762_v25 = vrot.slane %v2013_v0, %v761_v17 }
 0x3b9   : > { %v1318_v48 = vmax.f32 %v1317_v42, %v1146_v44  ;;  %v1336_v49 = vmax.f32 %v1335_v43, %v1199_v45  ;;  %v758_v29 = vrot.slane %v2013_v0, %v757_v20 }
 0x3ba   : > { %v1310_v50 = vrot.slane %v1309_v46, 4  ;;  %v1328_v52 = vrot.slane %v1327_v47, 4 }
 0x3bb   : > { %v1319_v53 = vrot.slane %v1318_v48, 4  ;;  %v1337_v54 = vrot.slane %v1336_v49, 4 }
 0x3bc   : > { %v1311_v55 = vmax.f32 %v1309_v46, %v1310_v50  ;;  %v1329_v56 = vmax.f32 %v1327_v47, %v1328_v52 }
 0x3bd   : > { %v1320_v57 = vmax.f32 %v1318_v48, %v1319_v53  ;;  %v1338_v60 = vmax.f32 %v1336_v49, %v1337_v54 }
 0x3be   : > { %v1312_v62 = vrot.slane %v1311_v55, 2  ;;  %v1330_v63 = vrot.slane %v1329_v56, 2 }
 0x3bf   : > { %v1321_v1 = vrot.slane %v1320_v57, 2  ;;  %v1339_v51 = vrot.slane %v1338_v60, 2 }
 0x3c0   : > { %v1313_v2 = vmax.f32 %v1311_v55, %v1312_v62  ;;  %v1331_v3 = vmax.f32 %v1329_v56, %v1330_v63 }
 0x3c1   : > { %v1322_v4 = vmax.f32 %v1320_v57, %v1321_v1  ;;  %v1340_v6 = vmax.f32 %v1338_v60, %v1339_v51 }
 0x3c2   : > { %v1314_v7 = vrot.slane %v1313_v2, 1  ;;  %v1332_v8 = vrot.slane %v1331_v3, 1 }
 0x3c3   : > { %v1323_v9 = vrot.slane %v1322_v4, 1  ;;  %v1341_v10 = vrot.slane %v1340_v6, 1 }
 0x3c4   : > { %v1315_v11 = vmax.f32 %v1313_v2, %v1314_v7  ;;  %v1333_v12 = vmax.f32 %v1331_v3, %v1332_v8 }
 0x3c5   : > { %v1324_v13 = vmax.f32 %v1322_v4, %v1323_v9  ;;  %v1342_v15 = vmax.f32 %v1340_v6, %v1341_v10 }
 0x3c7   : > { %v1388_v18 = vcombine.low %v1315_v11, %v1324_v13  ;;  %v1389_v19 = vcombine.low %v1333_v12, %v1342_v15 }
 0x3c9   : > { %v2029_v22 = vrot.slane %v1388_v18, %v2022_v14  ;;  %v2032_v23 = vrot.slane %v1389_v19, %v2022_v14 }
 0x3cb   : > { %v1420_v26 = vcombine.low %v2029_v22, %v2032_v23  ;;  %v1235_v27 = vpop.f32.mrb[12].mxu1  ;;  %v1288_v28 = vpop.f32.mrb[16].mxu0 }
 0x3cc   : > { %v1237_v61 = vpop.f32.mrb[13].mxu1  ;;  %v1290_v31 = vpop.f32.mrb[17].mxu0  ;;  %v1236_v34 = vadd.f32 %v1235_v27, %v754_v24  ;;  %v1289_v35 = vadd.f32 %v1288_v28, %v762_v25 }
 0x3cd   : > { %v1239_v32 = vpop.f32.mrb[14].mxu1  ;;  %v1292_v33 = vpop.f32.mrb[18].mxu0  ;;  %v1238_v40 = vadd.f32 %v1237_v61, %v758_v29  ;;  %v1291_v41 = vadd.f32 %v1290_v31, %v766_v30 }
 0x3ce   : > { %v1240_v36 = vadd.f32 %v1239_v32, %v754_v24  ;;  %v1293_v37 = vadd.f32 %v1292_v33, %v762_v25  ;;  %v1241_v38 = vpop.f32.mrb[15].mxu1  ;;  %v1294_v39 = vpop.f32.mrb[19].mxu0 }
 0x3cf   : > { %v1242_v42 = vadd.f32 %v1241_v38, %v758_v29  ;;  %v1295_v43 = vadd.f32 %v1294_v39, %v766_v30 }
 0x3d0   : > { %v1343_v44 = vmax.f32 %v1236_v34, %v1240_v36  ;;  %v1361_v45 = vmax.f32 %v1289_v35, %v1293_v37 }
 0x3d1   : > { %v1352_v46 = vmax.f32 %v1238_v40, %v1242_v42  ;;  %v1370_v47 = vmax.f32 %v1291_v41, %v1295_v43  ;;  %v1428_v41 = vrot.slane %v1420_v26, %v2022_v14  ;;  %v1379_v43 = vld [vmem:[%s1939_s17] sm:$0xff] }
 0x3d3   : > { %v1245_v48 = vpop.f32.mrb[16].mxu1  ;;  %v1298_v0 = vpop.f32.mrb[20].mxu0 }
 0x3d4   : > { %v1246_v49 = vadd.f32 %v1245_v48, %v754_v24  ;;  %v1299_v50 = vadd.f32 %v1298_v0, %v762_v25  ;;  %v1247_v52 = vpop.f32.mrb[17].mxu1  ;;  %v1300_v53 = vpop.f32.mrb[21].mxu0 }
 0x3d5   : > { %v1248_v54 = vadd.f32 %v1247_v52, %v758_v29  ;;  %v1301_v55 = vadd.f32 %v1300_v53, %v766_v30  ;;  %v1249_v56 = vpop.f32.mrb[18].mxu1  ;;  %v1302_v57 = vpop.f32.mrb[22].mxu0 }
 0x3d6   : > { %v1344_v58 = vmax.f32 %v1343_v44, %v1246_v49  ;;  %v1362_v59 = vmax.f32 %v1361_v45, %v1299_v50  ;;  %v1250_v60 = vadd.f32 %v1249_v56, %v754_v24  ;;  %v1303_v62 = vadd.f32 %v1302_v57, %v762_v25  ;;  %v1251_v63 = vpop.f32.mrb[19].mxu1  ;;  %v1304_v1 = vpop.f32.mrb[23].mxu0 }
 0x3d7   : > { %v1353_v51 = vmax.f32 %v1352_v46, %v1248_v54  ;;  %v1371_v2 = vmax.f32 %v1370_v47, %v1301_v55  ;;  %v1252_v3 = vadd.f32 %v1251_v63, %v758_v29  ;;  %v1305_v4 = vadd.f32 %v1304_v1, %v766_v30 }
 0x3d8   : > { %v1345_v5 = vmax.f32 %v1344_v58, %v1250_v60  ;;  %v1363_v6 = vmax.f32 %v1362_v59, %v1303_v62 }
 0x3d9   : > { %v1354_v7 = vmax.f32 %v1353_v51, %v1252_v3  ;;  %v1372_v8 = vmax.f32 %v1371_v2, %v1305_v4 }
 0x3da   : > { %v1346_v9 = vrot.slane %v1345_v5, 4  ;;  %v1364_v10 = vrot.slane %v1363_v6, 4 }
 0x3db   : > { %v1355_v11 = vrot.slane %v1354_v7, 4  ;;  %v1373_v12 = vrot.slane %v1372_v8, 4 }
 0x3dc   : > { %v1347_v13 = vmax.f32 %v1345_v5, %v1346_v9  ;;  %v1365_v15 = vmax.f32 %v1363_v6, %v1364_v10 }
 0x3dd   : > { %v1356_v16 = vmax.f32 %v1354_v7, %v1355_v11  ;;  %v1374_v17 = vmax.f32 %v1372_v8, %v1373_v12 }
 0x3de   : > { %v1348_v18 = vrot.slane %v1347_v13, 2  ;;  %v1366_v19 = vrot.slane %v1365_v15, 2 }
 0x3df   : > { %v1357_v20 = vrot.slane %v1356_v16, 2  ;;  %v1375_v21 = vrot.slane %v1374_v17, 2 }
 0x3e0   : > { %v1349_v24 = vmax.f32 %v1347_v13, %v1348_v18  ;;  %v1367_v25 = vmax.f32 %v1365_v15, %v1366_v19 }
 0x3e1   : > { %v1358_v27 = vmax.f32 %v1356_v16, %v1357_v20  ;;  %v1376_v28 = vmax.f32 %v1374_v17, %v1375_v21 }
 0x3e2   : > { %v1350_v29 = vrot.slane %v1349_v24, 1  ;;  %v1368_v30 = vrot.slane %v1367_v25, 1 }
 0x3e3   : > { %v1359_v61 = vrot.slane %v1358_v27, 1  ;;  %v1377_v31 = vrot.slane %v1376_v28, 1 }
 0x3e4   : > { %v1351_v32 = vmax.f32 %v1349_v24, %v1350_v29  ;;  %v1369_v33 = vmax.f32 %v1367_v25, %v1368_v30 }
 0x3e5   : > { %v1360_v34 = vmax.f32 %v1358_v27, %v1359_v61  ;;  %v1378_v35 = vmax.f32 %v1376_v28, %v1377_v31 }
 0x3e7   : > { %v1390_v36 = vcombine.low %v1351_v32, %v1360_v34  ;;  %v1391_v37 = vcombine.low %v1369_v33, %v1378_v35 }
 0x3e9   : > { %v1412_v38 = vrot.slane %v1390_v36, %v2022_v14  ;;  %v1419_v39 = vrot.slane %v1391_v37, %v2022_v14 }
 0x3eb   : > { %v1421_v40 = vcombine.low %v1412_v38, %v1419_v39 }
 0x3ed   : > { %v1435_v42 = vrot.slane %v1421_v40, %v2022_v14 }
 0x3ef   : > { %v1436_v44 = vcombine.low %v1428_v41, %v1435_v42 }
 0x3f1   : > { %v1438_v45 = vmax.f32 %v1379_v43, %v1436_v44 }
 0x3f3   : > { %1439 = vst [vmem:[%s1939_s17] sm:$0xff] %v1438_v45 }
 0x3f4 PF: > { %s20_s13 = sadd.s32 1, %s1802_s13   ;;  %s2082_s30 = smov %s1794_s11 }
 0x3f5   : > { %p17_p9 = scmp.ge.s32.totalorder %s20_s13, 6   ;;  %s2083_s10 = smov %s1798_s12 }
 0x3f6   : > { %s2084_s11 = smov %s2087_s15  ;;  %s2085_s12 = smov %s2091_s16 }
 0x3f7   :  { %19 = sbr.rel (!%p17_p9) target bundleno = 3 (0x3), region = 95 }
 0x3fe   :  { %1459 = vsyncpa [#allocation3], 1 }
 0x3ff   :  { %1461 = vsyncpa [#allocation3 + $0x1], 1 }

// kernel: pointnet_forward.3
= control target key start
LH: loop header
LB: loop body
LE: loop exit
PB: predicated region body
PF: predicated region fallthrough
CT: control target
= control target key end

     0   :  { %12 = vsyncpa [#allocation3], 0  ;;  %s4021_s0 = inlined_call_operand.vmem [shape: f32[2,1024], index: 0, kind: input, shape index: {}]   ;;  %s4022_s1 = inlined_call_operand.hbm [shape: bf16[1024,512], index: 1, kind: input, shape index: {}]   ;;  %s4023_s2 = inlined_call_operand.vmem [shape: f32[1,512], index: 2, kind: input, shape index: {}]   ;;  %s4024_s3 = inlined_call_operand.vmem [shape: bf16[512,256], index: 3, kind: input, shape index: {}]   ;;  %s4025_s4 = inlined_call_operand.vmem [shape: f32[1,256], index: 4, kind: input, shape index: {}]   ;;  %s4026_s5 = inlined_call_operand.vmem [shape: bf16[256,40], index: 5, kind: input, shape index: {}]   ;;  %s4027_s6 = inlined_call_operand.vmem [shape: f32[1,40], index: 6, kind: input, shape index: {}]   ;;  %s4028_s7 = inlined_call_operand.hbm [shape: f32[2,40], index: 7, kind: output, shape index: {}]  }
   0x1   :  { %13 = vsyncpa [#allocation4], 0  ;;  %s3622_s24 = smov [#allocation2]   ;;  %s3574_s28 = scalar_lea.hbm %s4022_s1, 32768 }
   0x2   :  { %s21_s25 = sshll.u32 %s3622_s24, 4  ;;  %p3575_p0 = scmp.ne.s32.totalorder %s4022_s1, %s3574_s28  ;;  %s22_s25 = int_to_ptr.vmem [resolvable:$true] %s21_s25 }
   0x3   :  { %p3578_p1 = scmp.lt.u32.totalorder %s3574_s28, %s4022_s1 }
   0x5   :  { %p3580_p2 = pnand %p3578_p1, %p3575_p0 }
   0x7   :  { %3583 = shalt.err (!%p3580_p2)
}
   0x8   :  { %s3584_s10 = scalar_lea.vmem %s22_s25, 32768  ;;  %p3589_p4 = scmp.lt.s32.totalorder %s22_s25, %s22_s25 }
   0x9   :  { %p3585_p3 = scmp.ne.s32.totalorder %s22_s25, %s3584_s10  ;;  %p3590_p5 = scmp.lt.s32.totalorder %s3584_s10, %s3584_s10 }
   0xb   :  { %p3591_p6 = por %p3590_p5, %p3589_p4 }
   0xd   :  { %p3592_p7 = pnand %p3591_p6, %p3585_p3 }
   0xf   :  { %3595 = shalt.err (!%p3592_p7)
}
  0x10   :  { %s3623_s11 = smov 256   ;;  %s3624_s12 = smov 16  }
  0x11   :  { %27 = dma.hbm_to_vmem [thread:$0]  %s4022_s1, 32768, %s22_s25, [#allocation3], %s3623_s11, %s3623_s11, %s3624_s12  }
  0x12   :  { %3618 = dma.done.wait [#allocation3], 32768  }
  0x13   :  { %3619 = vsyncadd [#allocation3], 4294934528  ;;  %v3072_v0 = vld [vmem:[#allocation2 + $0x4] ss:$16 sps:$4 sm:$0xff]   ;;  %v3076_v2 = vld [vmem:[#allocation2] ss:$16 sps:$4 sm:$0xff]   ;;  %v50_v38 = vlaneseq }
  0x14   :  { %v3074_v1 = vld [vmem:[#allocation2 + $0x204] ss:$16 sps:$4 sm:$0xff]   ;;  %1654 = vmatprep.subr.bf16.mxu1 %v3072_v0  ;;  %v3077_v3 = vld [vmem:[#allocation2 + $0x200] ss:$16 sps:$4 sm:$0xff]   ;;  %v3625_v36 = vmov 1983009808  }
  0x15   :  { %1695 = vmatprep.subr.bf16.mxu0 %v3074_v1  ;;  %v3078_v4 = vld [vmem:[#allocation2 + $0x24] ss:$16 sps:$4 sm:$0xff]   ;;  %1655 = vmatpush1.bf16.msra.mxu1 %v3076_v2  ;;  %v3082_v6 = vld [vmem:[#allocation2 + $0x20] ss:$16 sps:$4 sm:$0xff]   ;;  %v48_v37 = vunpack.c.l.s4 %v3625_v36  ;;  %v3679_v43 = vshrl.u32 %v50_v38, 7  ;;  %vm2647_vm0 = vcmask 320512  }
  0x16   :  { %1696 = vmatpush1.bf16.msra.mxu0 %v3077_v3  ;;  %v3080_v5 = vld [vmem:[#allocation2 + $0x224] ss:$16 sps:$4 sm:$0xff]   ;;  %1656 = vmatprep.subr.bf16.mxu1 %v3078_v4  ;;  %v3083_v7 = vld [vmem:[#allocation2 + $0x220] ss:$16 sps:$4 sm:$0xff]  }
  0x17   :  { %1697 = vmatprep.subr.bf16.mxu0 %v3080_v5  ;;  %v3084_v8 = vld [vmem:[#allocation2 + $0x44] ss:$16 sps:$4 sm:$0xff]   ;;  %v3088_v10 = vld [vmem:[#allocation2 + $0x40] ss:$16 sps:$4 sm:$0xff]   ;;  %v49_v42 = vunpack.c.0.s8 %v48_v37  ;;  %v3204_v37 = vld [vmem:[#allocation2 + $0xac] ss:$16 sps:$4 sm:$0xff]  }
  0x18   :  { %v3086_v9 = vld [vmem:[#allocation2 + $0x244] ss:$16 sps:$4 sm:$0xff]   ;;  %v3089_v11 = vld [vmem:[#allocation2 + $0x240] ss:$16 sps:$4 sm:$0xff]  }
  0x19   :  { %1657 = vmatpush1.bf16.msra.mxu1 %v3082_v6  ;;  %v3090_v12 = vld [vmem:[#allocation2 + $0x64] ss:$16 sps:$4 sm:$0xff]   ;;  %v3094_v14 = vld [vmem:[#allocation2 + $0x60] ss:$16 sps:$4 sm:$0xff]   ;;  %v3682_v49 = vsub.s32 %v49_v42, %v3679_v43  ;;  %v3701_v42 = vld [vmem:[%s4021_s0 + $0x8] sm:$0xff] }
  0x1a   :  { %1698 = vmatpush1.bf16.msra.mxu0 %v3083_v7  ;;  %1658 = vmatprep.subr.bf16.mxu1 %v3084_v8  ;;  %v3092_v13 = vld [vmem:[#allocation2 + $0x264] ss:$16 sps:$4 sm:$0xff]   ;;  %v3095_v15 = vld [vmem:[#allocation2 + $0x260] ss:$16 sps:$4 sm:$0xff]  }
  0x1b   :  { %1699 = vmatprep.subr.bf16.mxu0 %v3086_v9  ;;  %v3096_v16 = vld [vmem:[#allocation2 + $0x84] ss:$16 sps:$4 sm:$0xff]   ;;  %v3100_v18 = vld [vmem:[#allocation2 + $0x80] ss:$16 sps:$4 sm:$0xff]  }
  0x1c   :  { %v3098_v17 = vld [vmem:[#allocation2 + $0x284] ss:$16 sps:$4 sm:$0xff]   ;;  %v3101_v19 = vld [vmem:[#allocation2 + $0x280] ss:$16 sps:$4 sm:$0xff]  }
  0x1d   :  { %1659 = vmatpush1.bf16.msra.mxu1 %v3088_v10  ;;  %v3102_v20 = vld [vmem:[#allocation2 + $0xa4] ss:$16 sps:$4 sm:$0xff]   ;;  %v3106_v22 = vld [vmem:[#allocation2 + $0xa0] ss:$16 sps:$4 sm:$0xff]  }
  0x1e   :  { %1700 = vmatpush1.bf16.msra.mxu0 %v3089_v11  ;;  %1660 = vmatprep.subr.bf16.mxu1 %v3090_v12  ;;  %v3104_v21 = vld [vmem:[#allocation2 + $0x2a4] ss:$16 sps:$4 sm:$0xff]   ;;  %v3107_v23 = vld [vmem:[#allocation2 + $0x2a0] ss:$16 sps:$4 sm:$0xff]  }
  0x1f   :  { %1701 = vmatprep.subr.bf16.mxu0 %v3092_v13  ;;  %v3108_v24 = vld [vmem:[#allocation2 + $0xc4] ss:$16 sps:$4 sm:$0xff]   ;;  %v3112_v26 = vld [vmem:[#allocation2 + $0xc0] ss:$16 sps:$4 sm:$0xff]  }
  0x20   :  { %v3110_v25 = vld [vmem:[#allocation2 + $0x2c4] ss:$16 sps:$4 sm:$0xff]   ;;  %v3113_v27 = vld [vmem:[#allocation2 + $0x2c0] ss:$16 sps:$4 sm:$0xff]  }
  0x21   :  { %1661 = vmatpush1.bf16.msra.mxu1 %v3094_v14  ;;  %v3114_v28 = vld [vmem:[#allocation2 + $0xe4] ss:$16 sps:$4 sm:$0xff]   ;;  %v3118_v30 = vld [vmem:[#allocation2 + $0xe0] ss:$16 sps:$4 sm:$0xff]  }
  0x22   :  { %1702 = vmatpush1.bf16.msra.mxu0 %v3095_v15  ;;  %1662 = vmatprep.subr.bf16.mxu1 %v3096_v16  ;;  %v3116_v29 = vld [vmem:[#allocation2 + $0x2e4] ss:$16 sps:$4 sm:$0xff]   ;;  %v3119_v31 = vld [vmem:[#allocation2 + $0x2e0] ss:$16 sps:$4 sm:$0xff]   ;;  %v3174_v15 = vld [vmem:[#allocation2 + $0xc] ss:$16 sps:$4 sm:$0xff]  }
  0x23   :  { %1703 = vmatprep.subr.bf16.mxu0 %v3098_v17  ;;  %v3120_v32 = vld [vmem:[#allocation2 + $0x104] ss:$16 sps:$4 sm:$0xff]   ;;  %v3124_v34 = vld [vmem:[#allocation2 + $0x100] ss:$16 sps:$4 sm:$0xff]  }
  0x24   :  { %v3122_v33 = vld [vmem:[#allocation2 + $0x304] ss:$16 sps:$4 sm:$0xff]   ;;  %v3125_v35 = vld [vmem:[#allocation2 + $0x300] ss:$16 sps:$4 sm:$0xff]  }
  0x25   :  { %1663 = vmatpush1.bf16.msra.mxu1 %v3100_v18  ;;  %v3126_v39 = vld [vmem:[#allocation2 + $0x124] ss:$16 sps:$4 sm:$0xff]   ;;  %v3130_v41 = vld [vmem:[#allocation2 + $0x120] ss:$16 sps:$4 sm:$0xff]  }
  0x26   :  { %1704 = vmatpush1.bf16.msra.mxu0 %v3101_v19  ;;  %1664 = vmatprep.subr.bf16.mxu1 %v3102_v20  ;;  %v3128_v40 = vld [vmem:[#allocation2 + $0x324] ss:$16 sps:$4 sm:$0xff]   ;;  %v3131_v44 = vld [vmem:[#allocation2 + $0x320] ss:$16 sps:$4 sm:$0xff]   ;;  %v3172_v19 = vld [vmem:[#allocation2 + $0x8] ss:$16 sps:$4 sm:$0xff]  }
  0x27   :  { %1705 = vmatprep.subr.bf16.mxu0 %v3104_v21  ;;  %v3132_v45 = vld [vmem:[#allocation2 + $0x144] ss:$16 sps:$4 sm:$0xff]   ;;  %v3136_v47 = vld [vmem:[#allocation2 + $0x140] ss:$16 sps:$4 sm:$0xff]   ;;  %v3180_v21 = vld [vmem:[#allocation2 + $0x2c] ss:$16 sps:$4 sm:$0xff]  }
  0x28   :  { %v3134_v46 = vld [vmem:[#allocation2 + $0x344] ss:$16 sps:$4 sm:$0xff]   ;;  %v3137_v48 = vld [vmem:[#allocation2 + $0x340] ss:$16 sps:$4 sm:$0xff]  }
  0x29   :  { %1665 = vmatpush1.bf16.msra.mxu1 %v3106_v22  ;;  %v3138_v50 = vld [vmem:[#allocation2 + $0x164] ss:$16 sps:$4 sm:$0xff]   ;;  %v3142_v53 = vld [vmem:[#allocation2 + $0x160] ss:$16 sps:$4 sm:$0xff]  }
  0x2a   :  { %1706 = vmatpush1.bf16.msra.mxu0 %v3107_v23  ;;  %1666 = vmatprep.subr.bf16.mxu1 %v3108_v24  ;;  %v3140_v51 = vld [vmem:[#allocation2 + $0x364] ss:$16 sps:$4 sm:$0xff]   ;;  %v3143_v56 = vld [vmem:[#allocation2 + $0x360] ss:$16 sps:$4 sm:$0xff]   ;;  %v3178_v23 = vld [vmem:[#allocation2 + $0x28] ss:$16 sps:$4 sm:$0xff]  }
  0x2b   :  { %1707 = vmatprep.subr.bf16.mxu0 %v3110_v25  ;;  %v42_v52 = vld [vmem:[%s4021_s0] sm:$0xff]  ;;  %v3186_v25 = vld [vmem:[#allocation2 + $0x4c] ss:$16 sps:$4 sm:$0xff]  }
  0x2c   :  { %v53_v54 = vrot.slane %v42_v52, %v3682_v49  ;;  %v46_v55 = vcombine.high %v42_v52, %v42_v52  ;;  %v3144_v57 = vld [vmem:[#allocation2 + $0x184] ss:$16 sps:$4 sm:$0xff]   ;;  %v3148_v61 = vld [vmem:[#allocation2 + $0x180] ss:$16 sps:$4 sm:$0xff]  }
  0x2d   :  { %1667 = vmatpush1.bf16.msra.mxu1 %v3112_v26  ;;  %v3146_v58 = vld [vmem:[#allocation2 + $0x384] ss:$16 sps:$4 sm:$0xff]   ;;  %v3149_v0 = vld [vmem:[#allocation2 + $0x380] ss:$16 sps:$4 sm:$0xff]  }
  0x2e   :  { %1708 = vmatpush1.bf16.msra.mxu0 %v3113_v27  ;;  %1668 = vmatprep.subr.bf16.mxu1 %v3114_v28  ;;  %v61_v59 = vcombine.high %v53_v54, %v53_v54  ;;  %v60_v60 = vrot.slane %v46_v55, %v3682_v49  ;;  %v3150_v1 = vld [vmem:[#allocation2 + $0x1a4] ss:$16 sps:$4 sm:$0xff]   ;;  %v3154_v4 = vld [vmem:[#allocation2 + $0x1a0] ss:$16 sps:$4 sm:$0xff]   ;;  %v3692_v16 = vpack.c.bf16 %v53_v54, %v53_v54  ;;  %v3184_v27 = vld [vmem:[#allocation2 + $0x48] ss:$16 sps:$4 sm:$0xff]  }
  0x2f   :  { %1709 = vmatprep.subr.bf16.mxu0 %v3116_v29  ;;  %v3152_v2 = vld [vmem:[#allocation2 + $0x3a4] ss:$16 sps:$4 sm:$0xff]   ;;  %v3155_v5 = vld [vmem:[#allocation2 + $0x3a0] ss:$16 sps:$4 sm:$0xff]   ;;  %v3192_v29 = vld [vmem:[#allocation2 + $0x6c] ss:$16 sps:$4 sm:$0xff]  }
  0x30   :  { %v89_v62 = vpack.c.bf16 %v61_v59, %v61_v59  ;;  %v62_v63 = vcombine.high %v60_v60, %v60_v60  ;;  %v3156_v6 = vld [vmem:[#allocation2 + $0x1c4] ss:$16 sps:$4 sm:$0xff]   ;;  %v3160_v8 = vld [vmem:[#allocation2 + $0x1c0] ss:$16 sps:$4 sm:$0xff]   ;;  %v3694_v18 = vpack.c.bf16 %v60_v60, %v60_v60  ;;  %v3222_v55 = vld [vmem:[#allocation2 + $0x10c] ss:$16 sps:$4 sm:$0xff]  }
  0x31   :  { %1669 = vmatpush1.bf16.msra.mxu1 %v3118_v30  ;;  %v3158_v7 = vld [vmem:[#allocation2 + $0x3c4] ss:$16 sps:$4 sm:$0xff]   ;;  %v3161_v9 = vld [vmem:[#allocation2 + $0x3c0] ss:$16 sps:$4 sm:$0xff]   ;;  %v3228_v59 = vld [vmem:[#allocation2 + $0x12c] ss:$16 sps:$4 sm:$0xff]  }
  0x32   :  { %1710 = vmatpush1.bf16.msra.mxu0 %v3119_v31  ;;  %1670 = vmatprep.subr.bf16.mxu1 %v3120_v32  ;;  %v3689_v3 = vpack.c.bf16 %v62_v63, %v62_v63  ;;  %v3162_v10 = vld [vmem:[#allocation2 + $0x1e4] ss:$16 sps:$4 sm:$0xff]   ;;  %v3166_v12 = vld [vmem:[#allocation2 + $0x1e0] ss:$16 sps:$4 sm:$0xff]   ;;  %v3190_v31 = vld [vmem:[#allocation2 + $0x68] ss:$16 sps:$4 sm:$0xff]  }
  0x33   :  { %1711 = vmatprep.subr.bf16.mxu0 %v3122_v33  ;;  %1686 = vmatprep.mubr.bf16.mxu1 %v89_v62  ;;  %v3164_v11 = vld [vmem:[#allocation2 + $0x3e4] ss:$16 sps:$4 sm:$0xff]   ;;  %v3167_v13 = vld [vmem:[#allocation2 + $0x3e0] ss:$16 sps:$4 sm:$0xff]   ;;  %v3198_v33 = vld [vmem:[#allocation2 + $0x8c] ss:$16 sps:$4 sm:$0xff]  }
  0x34   :  { %1727 = vmatprep.mubr.bf16.mxu0 %v3689_v3  ;;  %v3171_v14 = vld [vmem:[#allocation2 + $0x404] ss:$16 sps:$4 sm:$0xff]   ;;  %v3169_v17 = vld [vmem:[#allocation2 + $0x400] ss:$16 sps:$4 sm:$0xff]   ;;  %v3234_v63 = vld [vmem:[#allocation2 + $0x14c] ss:$16 sps:$4 sm:$0xff]  }
  0x35   :  { %1671 = vmatpush1.bf16.msra.mxu1 %v3124_v34  ;;  %v3177_v20 = vld [vmem:[#allocation2 + $0x424] ss:$16 sps:$4 sm:$0xff]   ;;  %v3175_v22 = vld [vmem:[#allocation2 + $0x420] ss:$16 sps:$4 sm:$0xff]  }
  0x36   :  { %1712 = vmatpush1.bf16.msra.mxu0 %v3125_v35  ;;  %1672 = vmatprep.subr.bf16.mxu1 %v3126_v39  ;;  %v3183_v24 = vld [vmem:[#allocation2 + $0x444] ss:$16 sps:$4 sm:$0xff]   ;;  %v3181_v26 = vld [vmem:[#allocation2 + $0x440] ss:$16 sps:$4 sm:$0xff]   ;;  %v3196_v35 = vld [vmem:[#allocation2 + $0x88] ss:$16 sps:$4 sm:$0xff]  }
  0x37   :  { %1713 = vmatprep.subr.bf16.mxu0 %v3128_v40  ;;  %v3189_v28 = vld [vmem:[#allocation2 + $0x464] ss:$16 sps:$4 sm:$0xff]   ;;  %v3187_v30 = vld [vmem:[#allocation2 + $0x460] ss:$16 sps:$4 sm:$0xff]   ;;  %v3202_v39 = vld [vmem:[#allocation2 + $0xa8] ss:$16 sps:$4 sm:$0xff]  }
  0x38   :  { %v3195_v32 = vld [vmem:[#allocation2 + $0x484] ss:$16 sps:$4 sm:$0xff]   ;;  %v3193_v34 = vld [vmem:[#allocation2 + $0x480] ss:$16 sps:$4 sm:$0xff]  }
  0x39   :  { %1673 = vmatpush1.bf16.msra.mxu1 %v3130_v41  ;;  %v3201_v36 = vld [vmem:[#allocation2 + $0x4a4] ss:$16 sps:$4 sm:$0xff]   ;;  %v3199_v38 = vld [vmem:[#allocation2 + $0x4a0] ss:$16 sps:$4 sm:$0xff]   ;;  %v3210_v41 = vld [vmem:[#allocation2 + $0xcc] ss:$16 sps:$4 sm:$0xff]  }
  0x3a   :  { %1714 = vmatpush1.bf16.msra.mxu0 %v3131_v44  ;;  %1674 = vmatprep.subr.bf16.mxu1 %v3132_v45  ;;  %v3207_v40 = vld [vmem:[#allocation2 + $0x4c4] ss:$16 sps:$4 sm:$0xff]   ;;  %v3705_v44 = vrot.slane %v3701_v42, %v3682_v49  ;;  %v3205_v45 = vld [vmem:[#allocation2 + $0x4c0] ss:$16 sps:$4 sm:$0xff]  }
  0x3b   :  { %1715 = vmatprep.subr.bf16.mxu0 %v3134_v46  ;;  %v3208_v46 = vld [vmem:[#allocation2 + $0xc8] ss:$16 sps:$4 sm:$0xff]   ;;  %v3211_v52 = vld [vmem:[#allocation2 + $0x4e0] ss:$16 sps:$4 sm:$0xff]   ;;  %v3219_v54 = vld [vmem:[#allocation2 + $0x504] ss:$16 sps:$4 sm:$0xff]  }
  0x3c   :  { %v3223_v60 = vld [vmem:[#allocation2 + $0x520] ss:$16 sps:$4 sm:$0xff]  }
  0x3d   :  { %1675 = vmatpush1.bf16.msra.mxu1 %v3136_v47  ;;  %v78_v47 = vcombine.high %v3705_v44, %v3705_v44 }
  0x3e   :  { %1716 = vmatpush1.bf16.msra.mxu0 %v3137_v48  ;;  %1676 = vmatprep.subr.bf16.mxu1 %v3138_v50  ;;  %v3213_v48 = vld [vmem:[#allocation2 + $0x4e4] ss:$16 sps:$4 sm:$0xff]   ;;  %v3216_v50 = vld [vmem:[#allocation2 + $0xec] ss:$16 sps:$4 sm:$0xff]  }
  0x3f   :  { %1717 = vmatprep.subr.bf16.mxu0 %v3140_v51  ;;  %v3709_v51 = vpack.c.bf16 %v78_v47, %v78_v47  ;;  %v3289_v47 = vld [vmem:[#allocation2 + $0x680] ss:$16 sps:$4 sm:$0xff]  }
  0x41   :  { %1677 = vmatpush1.bf16.msra.mxu1 %v3142_v53  ;;  %v3214_v53 = vld [vmem:[#allocation2 + $0xe8] ss:$16 sps:$4 sm:$0xff]  }
  0x42   :  { %1718 = vmatpush1.bf16.msra.mxu0 %v3143_v56  ;;  %1678 = vmatprep.subr.bf16.mxu1 %v3144_v57  ;;  %v3217_v56 = vld [vmem:[#allocation2 + $0x500] ss:$16 sps:$4 sm:$0xff]   ;;  %v3220_v57 = vld [vmem:[#allocation2 + $0x108] ss:$16 sps:$4 sm:$0xff]  }
  0x43   :  { %1719 = vmatprep.subr.bf16.mxu0 %v3146_v58  ;;  %v3225_v58 = vld [vmem:[#allocation2 + $0x524] ss:$16 sps:$4 sm:$0xff]  }
  0x45   :  { %1679 = vmatpush1.bf16.msra.mxu1 %v3148_v61  ;;  %v3226_v61 = vld [vmem:[#allocation2 + $0x128] ss:$16 sps:$4 sm:$0xff]  }
  0x46   :  { %1720 = vmatpush1.bf16.msra.mxu0 %v3149_v0  ;;  %1680 = vmatprep.subr.bf16.mxu1 %v3150_v1  ;;  %v3229_v0 = vld [vmem:[#allocation2 + $0x540] ss:$16 sps:$4 sm:$0xff]   ;;  %v3232_v1 = vld [vmem:[#allocation2 + $0x148] ss:$16 sps:$4 sm:$0xff]  }
  0x47   :  { %1721 = vmatprep.subr.bf16.mxu0 %v3152_v2  ;;  %v3237_v2 = vld [vmem:[#allocation2 + $0x564] ss:$16 sps:$4 sm:$0xff]  }
  0x49   :  { %1681 = vmatpush1.bf16.msra.mxu1 %v3154_v4  ;;  %v3240_v4 = vld [vmem:[#allocation2 + $0x16c] ss:$16 sps:$4 sm:$0xff]  }
  0x4a   :  { %1722 = vmatpush1.bf16.msra.mxu0 %v3155_v5  ;;  %1682 = vmatprep.subr.bf16.mxu1 %v3156_v6  ;;  %v3235_v5 = vld [vmem:[#allocation2 + $0x560] ss:$16 sps:$4 sm:$0xff]   ;;  %v3238_v6 = vld [vmem:[#allocation2 + $0x168] ss:$16 sps:$4 sm:$0xff]  }
  0x4b   :  { %1723 = vmatprep.subr.bf16.mxu0 %v3158_v7  ;;  %v3243_v7 = vld [vmem:[#allocation2 + $0x584] ss:$16 sps:$4 sm:$0xff]  }
  0x4d   :  { %1683 = vmatpush1.bf16.msra.mxu1 %v3160_v8  ;;  %v3246_v8 = vld [vmem:[#allocation2 + $0x18c] ss:$16 sps:$4 sm:$0xff]  }
  0x4e   :  { %1724 = vmatpush1.bf16.msra.mxu0 %v3161_v9  ;;  %1684 = vmatprep.subr.bf16.mxu1 %v3162_v10  ;;  %v3241_v9 = vld [vmem:[#allocation2 + $0x580] ss:$16 sps:$4 sm:$0xff]   ;;  %v3244_v10 = vld [vmem:[#allocation2 + $0x188] ss:$16 sps:$4 sm:$0xff]  }
  0x4f   :  { %1725 = vmatprep.subr.bf16.mxu0 %v3164_v11  ;;  %v3249_v11 = vld [vmem:[#allocation2 + $0x5a4] ss:$16 sps:$4 sm:$0xff]  }
  0x51   :  { %1685 = vmatpush1.bf16.msra.mxu1 %v3166_v12  ;;  %v3252_v12 = vld [vmem:[#allocation2 + $0x1ac] ss:$16 sps:$4 sm:$0xff]  }
  0x52   :  { %1726 = vmatpush1.bf16.msra.mxu0 %v3167_v13  ;;  %1818 = vmatprep.subr.bf16.mxu1 %v3174_v15  ;;  %v3247_v13 = vld [vmem:[#allocation2 + $0x5a0] ss:$16 sps:$4 sm:$0xff]   ;;  %v3255_v15 = vld [vmem:[#allocation2 + $0x5c4] ss:$16 sps:$4 sm:$0xff]  }
  0x53   :  { %1736 = vmatprep.subr.bf16.mxu0 %v3171_v14  ;;  %v3250_v14 = vld [vmem:[#allocation2 + $0x1a8] ss:$16 sps:$4 sm:$0xff]  }
  0x54   :  { %1687 = vmatmul.mubr.bf16.vlgmr.msra.gmra.mrb[0].mxu1 %v3692_v16 }
  0x55   :  { %1728 = vmatmul.mubr.bf16.vlgmr.msra.gmra.mrb[0].mxu0 %v3694_v18  ;;  %1819 = vmatpush1.bf16.msra.mxu1 %v3172_v19  ;;  %v63_v19 = vcombine.high %v3701_v42, %v3701_v42  ;;  %v3283_v42 = vld [vmem:[#allocation2 + $0x660] ss:$16 sps:$4 sm:$0xff]  }
  0x56   :  { %1737 = vmatpush1.bf16.msra.mxu0 %v3169_v17  ;;  %1820 = vmatprep.subr.bf16.mxu1 %v3180_v21  ;;  %v3258_v17 = vld [vmem:[#allocation2 + $0x1cc] ss:$16 sps:$4 sm:$0xff]   ;;  %v3256_v21 = vld [vmem:[#allocation2 + $0x1c8] ss:$16 sps:$4 sm:$0xff]  }
  0x57   :  { %1738 = vmatprep.subr.bf16.mxu0 %v3177_v20  ;;  %1850 = vmatprep.mubr.bf16.mxu1 %v89_v62  ;;  %v3231_v62 = vld [vmem:[#allocation2 + $0x544] ss:$16 sps:$4 sm:$0xff]   ;;  %v3253_v20 = vld [vmem:[#allocation2 + $0x5c0] ss:$16 sps:$4 sm:$0xff]  }
  0x58   :  { %1768 = vmatprep.mubr.bf16.mxu0 %v3709_v51 }
  0x59   :  { %1821 = vmatpush1.bf16.msra.mxu1 %v3178_v23  ;;  %v3264_v23 = vld [vmem:[#allocation2 + $0x1ec] ss:$16 sps:$4 sm:$0xff]  }
  0x5a   :  { %1739 = vmatpush1.bf16.msra.mxu0 %v3175_v22  ;;  %1822 = vmatprep.subr.bf16.mxu1 %v3186_v25  ;;  %v3261_v22 = vld [vmem:[#allocation2 + $0x5e4] ss:$16 sps:$4 sm:$0xff]   ;;  %v3259_v25 = vld [vmem:[#allocation2 + $0x5e0] ss:$16 sps:$4 sm:$0xff]  }
  0x5b   :  { %1740 = vmatprep.subr.bf16.mxu0 %v3183_v24  ;;  %v3715_v24 = vrot.slane %v63_v19, %v3682_v49  ;;  %v3268_v49 = vld [vmem:[#allocation2 + $0x208] ss:$16 sps:$4 sm:$0xff]   ;;  %v3337_v19 = vld [vmem:[#allocation2 + $0x780] ss:$16 sps:$4 sm:$0xff]  }
  0x5d   :  { %1823 = vmatpush1.bf16.msra.mxu1 %v3184_v27  ;;  %v3267_v27 = vld [vmem:[#allocation2 + $0x604] ss:$16 sps:$4 sm:$0xff]  }
  0x5e   :  { %1741 = vmatpush1.bf16.msra.mxu0 %v3181_v26  ;;  %1824 = vmatprep.subr.bf16.mxu1 %v3192_v29  ;;  %v3262_v26 = vld [vmem:[#allocation2 + $0x1e8] ss:$16 sps:$4 sm:$0xff]   ;;  %v79_v29 = vcombine.high %v3715_v24, %v3715_v24 }
  0x5f   :  { %1742 = vmatprep.subr.bf16.mxu0 %v3189_v28  ;;  %v3270_v28 = vld [vmem:[#allocation2 + $0x20c] ss:$16 sps:$4 sm:$0xff]  }
  0x61   :  { %1825 = vmatpush1.bf16.msra.mxu1 %v3190_v31  ;;  %v3265_v31 = vld [vmem:[#allocation2 + $0x600] ss:$16 sps:$4 sm:$0xff]  }
  0x62   :  { %1743 = vmatpush1.bf16.msra.mxu0 %v3187_v30  ;;  %1826 = vmatprep.subr.bf16.mxu1 %v3198_v33  ;;  %v3721_v30 = vpack.c.bf16 %v3705_v44, %v3705_v44  ;;  %v3276_v33 = vld [vmem:[#allocation2 + $0x22c] ss:$16 sps:$4 sm:$0xff]   ;;  %v3286_v44 = vld [vmem:[#allocation2 + $0x268] ss:$16 sps:$4 sm:$0xff]  }
  0x63   :  { %1744 = vmatprep.subr.bf16.mxu0 %v3195_v32  ;;  %v3273_v32 = vld [vmem:[#allocation2 + $0x624] ss:$16 sps:$4 sm:$0xff]  }
  0x65   :  { %1827 = vmatpush1.bf16.msra.mxu1 %v3196_v35  ;;  %v3271_v35 = vld [vmem:[#allocation2 + $0x620] ss:$16 sps:$4 sm:$0xff]  }
  0x66   :  { %1745 = vmatpush1.bf16.msra.mxu0 %v3193_v34  ;;  %1828 = vmatprep.subr.bf16.mxu1 %v3204_v37  ;;  %v3723_v34 = vpack.c.bf16 %v79_v29, %v79_v29  ;;  %v3279_v37 = vld [vmem:[#allocation2 + $0x644] ss:$16 sps:$4 sm:$0xff]   ;;  %v3352_v29 = vld [vmem:[#allocation2 + $0x3c8] ss:$16 sps:$4 sm:$0xff]  }
  0x67   :  { %1746 = vmatprep.subr.bf16.mxu0 %v3201_v36  ;;  %v3274_v36 = vld [vmem:[#allocation2 + $0x228] ss:$16 sps:$4 sm:$0xff]  }
  0x69   :  { %1829 = vmatpush1.bf16.msra.mxu1 %v3202_v39  ;;  %v3277_v39 = vld [vmem:[#allocation2 + $0x640] ss:$16 sps:$4 sm:$0xff]  }
  0x6a   :  { %1747 = vmatpush1.bf16.msra.mxu0 %v3199_v38  ;;  %1830 = vmatprep.subr.bf16.mxu1 %v3210_v41  ;;  %v3282_v38 = vld [vmem:[#allocation2 + $0x24c] ss:$16 sps:$4 sm:$0xff]   ;;  %v3285_v41 = vld [vmem:[#allocation2 + $0x664] ss:$16 sps:$4 sm:$0xff]  }
  0x6b   :  { %1748 = vmatprep.subr.bf16.mxu0 %v3207_v40  ;;  %v3280_v40 = vld [vmem:[#allocation2 + $0x248] ss:$16 sps:$4 sm:$0xff]  }
  0x6d   :  { %1831 = vmatpush1.bf16.msra.mxu1 %v3208_v46  ;;  %v3294_v46 = vld [vmem:[#allocation2 + $0x28c] ss:$16 sps:$4 sm:$0xff]  }
  0x6e   :  { %1749 = vmatpush1.bf16.msra.mxu0 %v3205_v45  ;;  %1832 = vmatprep.subr.bf16.mxu1 %v3216_v50  ;;  %v3291_v45 = vld [vmem:[#allocation2 + $0x684] ss:$16 sps:$4 sm:$0xff]   ;;  %v3300_v50 = vld [vmem:[#allocation2 + $0x2ac] ss:$16 sps:$4 sm:$0xff]  }
  0x6f   :  { %1750 = vmatprep.subr.bf16.mxu0 %v3213_v48  ;;  %v3297_v48 = vld [vmem:[#allocation2 + $0x6a4] ss:$16 sps:$4 sm:$0xff]  }
  0x71   :  { %1833 = vmatpush1.bf16.msra.mxu1 %v3214_v53  ;;  %v3298_v53 = vld [vmem:[#allocation2 + $0x2a8] ss:$16 sps:$4 sm:$0xff]  }
  0x72   :  { %1751 = vmatpush1.bf16.msra.mxu0 %v3211_v52  ;;  %1834 = vmatprep.subr.bf16.mxu1 %v3222_v55  ;;  %v3295_v52 = vld [vmem:[#allocation2 + $0x6a0] ss:$16 sps:$4 sm:$0xff]   ;;  %v3306_v55 = vld [vmem:[#allocation2 + $0x2cc] ss:$16 sps:$4 sm:$0xff]  }
  0x73   :  { %1752 = vmatprep.subr.bf16.mxu0 %v3219_v54  ;;  %v3303_v54 = vld [vmem:[#allocation2 + $0x6c4] ss:$16 sps:$4 sm:$0xff]  }
  0x75   :  { %1835 = vmatpush1.bf16.msra.mxu1 %v3220_v57  ;;  %v3304_v57 = vld [vmem:[#allocation2 + $0x2c8] ss:$16 sps:$4 sm:$0xff]  }
  0x76   :  { %1753 = vmatpush1.bf16.msra.mxu0 %v3217_v56  ;;  %1836 = vmatprep.subr.bf16.mxu1 %v3228_v59  ;;  %v3301_v56 = vld [vmem:[#allocation2 + $0x6c0] ss:$16 sps:$4 sm:$0xff]   ;;  %v3312_v59 = vld [vmem:[#allocation2 + $0x2ec] ss:$16 sps:$4 sm:$0xff]  }
  0x77   :  { %1754 = vmatprep.subr.bf16.mxu0 %v3225_v58  ;;  %v3309_v58 = vld [vmem:[#allocation2 + $0x6e4] ss:$16 sps:$4 sm:$0xff]  }
  0x79   :  { %1837 = vmatpush1.bf16.msra.mxu1 %v3226_v61  ;;  %v3310_v61 = vld [vmem:[#allocation2 + $0x2e8] ss:$16 sps:$4 sm:$0xff]  }
  0x7a   :  { %1755 = vmatpush1.bf16.msra.mxu0 %v3223_v60  ;;  %1838 = vmatprep.subr.bf16.mxu1 %v3234_v63  ;;  %v3307_v60 = vld [vmem:[#allocation2 + $0x6e0] ss:$16 sps:$4 sm:$0xff]   ;;  %v3318_v63 = vld [vmem:[#allocation2 + $0x30c] ss:$16 sps:$4 sm:$0xff]  }
  0x7b   :  { %1756 = vmatprep.subr.bf16.mxu0 %v3231_v62  ;;  %v3315_v62 = vld [vmem:[#allocation2 + $0x704] ss:$16 sps:$4 sm:$0xff]  }
  0x7d   :  { %1839 = vmatpush1.bf16.msra.mxu1 %v3232_v1  ;;  %v3316_v1 = vld [vmem:[#allocation2 + $0x308] ss:$16 sps:$4 sm:$0xff]  }
  0x7e   :  { %1757 = vmatpush1.bf16.msra.mxu0 %v3229_v0  ;;  %1840 = vmatprep.subr.bf16.mxu1 %v3240_v4  ;;  %v3313_v0 = vld [vmem:[#allocation2 + $0x700] ss:$16 sps:$4 sm:$0xff]   ;;  %v3324_v4 = vld [vmem:[#allocation2 + $0x32c] ss:$16 sps:$4 sm:$0xff]  }
  0x7f   :  { %1758 = vmatprep.subr.bf16.mxu0 %v3237_v2  ;;  %v3321_v2 = vld [vmem:[#allocation2 + $0x724] ss:$16 sps:$4 sm:$0xff]  }
  0x81   :  { %1841 = vmatpush1.bf16.msra.mxu1 %v3238_v6  ;;  %v3322_v6 = vld [vmem:[#allocation2 + $0x328] ss:$16 sps:$4 sm:$0xff]  }
  0x82   :  { %1759 = vmatpush1.bf16.msra.mxu0 %v3235_v5  ;;  %1842 = vmatprep.subr.bf16.mxu1 %v3246_v8  ;;  %v3319_v5 = vld [vmem:[#allocation2 + $0x720] ss:$16 sps:$4 sm:$0xff]   ;;  %v3330_v8 = vld [vmem:[#allocation2 + $0x34c] ss:$16 sps:$4 sm:$0xff]  }
  0x83   :  { %1760 = vmatprep.subr.bf16.mxu0 %v3243_v7  ;;  %v3327_v7 = vld [vmem:[#allocation2 + $0x744] ss:$16 sps:$4 sm:$0xff]  }
  0x85   :  { %1843 = vmatpush1.bf16.msra.mxu1 %v3244_v10  ;;  %v3328_v10 = vld [vmem:[#allocation2 + $0x348] ss:$16 sps:$4 sm:$0xff]  }
  0x86   :  { %1761 = vmatpush1.bf16.msra.mxu0 %v3241_v9  ;;  %1844 = vmatprep.subr.bf16.mxu1 %v3252_v12  ;;  %v3325_v9 = vld [vmem:[#allocation2 + $0x740] ss:$16 sps:$4 sm:$0xff]   ;;  %v3336_v12 = vld [vmem:[#allocation2 + $0x36c] ss:$16 sps:$4 sm:$0xff]  }
  0x87   :  { %1762 = vmatprep.subr.bf16.mxu0 %v3249_v11  ;;  %v3333_v11 = vld [vmem:[#allocation2 + $0x764] ss:$16 sps:$4 sm:$0xff]  }
  0x89   :  { %1845 = vmatpush1.bf16.msra.mxu1 %v3250_v14  ;;  %v3334_v14 = vld [vmem:[#allocation2 + $0x368] ss:$16 sps:$4 sm:$0xff]  }
  0x8a   :  { %1763 = vmatpush1.bf16.msra.mxu0 %v3247_v13  ;;  %1846 = vmatprep.subr.bf16.mxu1 %v3258_v17  ;;  %v3331_v13 = vld [vmem:[#allocation2 + $0x760] ss:$16 sps:$4 sm:$0xff]   ;;  %v3342_v17 = vld [vmem:[#allocation2 + $0x38c] ss:$16 sps:$4 sm:$0xff]  }
  0x8b   :  { %1764 = vmatprep.subr.bf16.mxu0 %v3255_v15  ;;  %v3339_v15 = vld [vmem:[#allocation2 + $0x784] ss:$16 sps:$4 sm:$0xff]  }
  0x8d   :  { %1847 = vmatpush1.bf16.msra.mxu1 %v3256_v21  ;;  %v3345_v21 = vld [vmem:[#allocation2 + $0x7a4] ss:$16 sps:$4 sm:$0xff]  }
  0x8e   :  { %1765 = vmatpush1.bf16.msra.mxu0 %v3253_v20  ;;  %1848 = vmatprep.subr.bf16.mxu1 %v3264_v23  ;;  %v3340_v20 = vld [vmem:[#allocation2 + $0x388] ss:$16 sps:$4 sm:$0xff]   ;;  %v3343_v23 = vld [vmem:[#allocation2 + $0x7a0] ss:$16 sps:$4 sm:$0xff]  }
  0x8f   :  { %1766 = vmatprep.subr.bf16.mxu0 %v3261_v22  ;;  %v3348_v22 = vld [vmem:[#allocation2 + $0x3ac] ss:$16 sps:$4 sm:$0xff]  }
  0x91   :  { %1849 = vmatpush1.bf16.msra.mxu1 %v3262_v26  ;;  %v3351_v26 = vld [vmem:[#allocation2 + $0x7c4] ss:$16 sps:$4 sm:$0xff]  }
  0x92   :  { %1767 = vmatpush1.bf16.msra.mxu0 %v3259_v25  ;;  %1859 = vmatprep.subr.bf16.mxu1 %v3270_v28  ;;  %v3346_v25 = vld [vmem:[#allocation2 + $0x3a8] ss:$16 sps:$4 sm:$0xff]   ;;  %v3349_v28 = vld [vmem:[#allocation2 + $0x7c0] ss:$16 sps:$4 sm:$0xff]  }
  0x93   :  { %1777 = vmatprep.subr.bf16.mxu0 %v3267_v27  ;;  %v3354_v27 = vld [vmem:[#allocation2 + $0x3cc] ss:$16 sps:$4 sm:$0xff]  }
  0x94   :  { %1851 = vmatmul.mubr.bf16.vlgmr.msra.gmra.mrb[4].mxu1 %v3692_v16  ;;  %v3288_v16 = vld [vmem:[#allocation2 + $0x26c] ss:$16 sps:$4 sm:$0xff]  }
  0x95   :  { %1769 = vmatmul.mubr.bf16.vlgmr.msra.gmra.mrb[0].mxu0 %v3721_v30  ;;  %1860 = vmatpush1.bf16.msra.mxu1 %v3268_v49  ;;  %v3360_v49 = vld [vmem:[#allocation2 + $0x3ec] ss:$16 sps:$4 sm:$0xff]  }
  0x96   :  { %1778 = vmatpush1.bf16.msra.mxu0 %v3265_v31  ;;  %1861 = vmatprep.subr.bf16.mxu1 %v3276_v33  ;;  %v3357_v31 = vld [vmem:[#allocation2 + $0x7e4] ss:$16 sps:$4 sm:$0xff]   ;;  %v3358_v33 = vld [vmem:[#allocation2 + $0x3e8] ss:$16 sps:$4 sm:$0xff]  }
  0x97   :  { %1779 = vmatprep.subr.bf16.mxu0 %v3273_v32  ;;  %1809 = vmatprep.mubr.bf16.mxu0 %v3723_v34  ;;  %v3355_v32 = vld [vmem:[#allocation2 + $0x7e0] ss:$16 sps:$4 sm:$0xff]  }
  0x98   :  { %1891 = vmatprep.mubr.bf16.mxu1 %v3689_v3  ;;  %v3292_v3 = vld [vmem:[#allocation2 + $0x288] ss:$16 sps:$4 sm:$0xff]  }
  0x99   :  { %1862 = vmatpush1.bf16.msra.mxu1 %v3274_v36  ;;  %v3362_v36 = vld [vmem:[#allocation2 + $0x408] ss:$16 sps:$4 sm:$0xff]  }
  0x9a   :  { %1780 = vmatpush1.bf16.msra.mxu0 %v3271_v35  ;;  %1863 = vmatprep.subr.bf16.mxu1 %v3282_v38  ;;  %v3364_v35 = vld [vmem:[#allocation2 + $0x40c] ss:$16 sps:$4 sm:$0xff]  }
  0x9b   :  { %1781 = vmatprep.subr.bf16.mxu0 %v3279_v37  ;;  %v3731_v37 = vpack.c.bf16 %v3715_v24, %v3715_v24  ;;  %v3367_v38 = vld [vmem:[#allocation2 + $0x42c] ss:$16 sps:$4 sm:$0xff]  }
  0x9c   :  { %v3463_v24 = vld [vmem:[%s4024_s3 + $0x14] ss:$8 sps:$4 sm:$0xff]  }
  0x9d   :  { %1864 = vmatpush1.bf16.msra.mxu1 %v3280_v40  ;;  %v3460_v40 = vld [vmem:[%s4024_s3 + $0x4] ss:$8 sps:$4 sm:$0xff]  }
  0x9e   :  { %1782 = vmatpush1.bf16.msra.mxu0 %v3277_v39  ;;  %1865 = vmatprep.subr.bf16.mxu1 %v3288_v16  ;;  %v3458_v39 = vld [vmem:[%s4024_s3] ss:$8 sps:$4 sm:$0xff]   ;;  %v3370_v16 = vld [vmem:[#allocation2 + $0x44c] ss:$16 sps:$4 sm:$0xff]  }
  0x9f   :  { %1783 = vmatprep.subr.bf16.mxu0 %v3285_v41  ;;  %v3365_v41 = vld [vmem:[#allocation2 + $0x428] ss:$16 sps:$4 sm:$0xff]  }
  0xa1   :  { %1866 = vmatpush1.bf16.msra.mxu1 %v3286_v44  ;;  %v3368_v44 = vld [vmem:[#allocation2 + $0x448] ss:$16 sps:$4 sm:$0xff]  }
  0xa2   :  { %1784 = vmatpush1.bf16.msra.mxu0 %v3283_v42  ;;  %1867 = vmatprep.subr.bf16.mxu1 %v3294_v46  ;;  %v3466_v42 = vld [vmem:[%s4024_s3 + $0x24] ss:$8 sps:$4 sm:$0xff]   ;;  %v3371_v46 = vld [vmem:[#allocation2 + $0x468] ss:$16 sps:$4 sm:$0xff]  }
  0xa3   :  { %1785 = vmatprep.subr.bf16.mxu0 %v3291_v45  ;;  %v3464_v45 = vld [vmem:[%s4024_s3 + $0x20] ss:$8 sps:$4 sm:$0xff]  }
  0xa5   :  { %1868 = vmatpush1.bf16.msra.mxu1 %v3292_v3  ;;  %v3469_v3 = vld [vmem:[%s4024_s3 + $0x34] ss:$8 sps:$4 sm:$0xff]  }
  0xa6   :  { %1786 = vmatpush1.bf16.msra.mxu0 %v3289_v47  ;;  %1869 = vmatprep.subr.bf16.mxu1 %v3300_v50  ;;  %v3376_v47 = vld [vmem:[#allocation2 + $0x48c] ss:$16 sps:$4 sm:$0xff]  }
  0xa7   :  { %1787 = vmatprep.subr.bf16.mxu0 %v3297_v48  ;;  %v3467_v48 = vld [vmem:[%s4024_s3 + $0x30] ss:$8 sps:$4 sm:$0xff]   ;;  %v3472_v50 = vld [vmem:[%s4024_s3 + $0x44] ss:$8 sps:$4 sm:$0xff]  }
  0xa9   :  { %1870 = vmatpush1.bf16.msra.mxu1 %v3298_v53  ;;  %v3379_v53 = vld [vmem:[#allocation2 + $0x4ac] ss:$16 sps:$4 sm:$0xff]  }
  0xaa   :  { %1788 = vmatpush1.bf16.msra.mxu0 %v3295_v52  ;;  %1871 = vmatprep.subr.bf16.mxu1 %v3306_v55  ;;  %v3374_v52 = vld [vmem:[#allocation2 + $0x488] ss:$16 sps:$4 sm:$0xff]   ;;  %v3475_v55 = vld [vmem:[%s4024_s3 + $0x54] ss:$8 sps:$4 sm:$0xff]  }
  0xab   :  { %1789 = vmatprep.subr.bf16.mxu0 %v3303_v54  ;;  %v3470_v54 = vld [vmem:[%s4024_s3 + $0x40] ss:$8 sps:$4 sm:$0xff]  }
  0xad   :  { %1872 = vmatpush1.bf16.msra.mxu1 %v3304_v57  ;;  %v3382_v57 = vld [vmem:[#allocation2 + $0x4cc] ss:$16 sps:$4 sm:$0xff]  }
  0xae   :  { %1790 = vmatpush1.bf16.msra.mxu0 %v3301_v56  ;;  %1873 = vmatprep.subr.bf16.mxu1 %v3312_v59  ;;  %v3377_v56 = vld [vmem:[#allocation2 + $0x4a8] ss:$16 sps:$4 sm:$0xff]   ;;  %v3478_v59 = vld [vmem:[%s4024_s3 + $0x64] ss:$8 sps:$4 sm:$0xff]  }
  0xaf   :  { %1791 = vmatprep.subr.bf16.mxu0 %v3309_v58  ;;  %v3473_v58 = vld [vmem:[%s4024_s3 + $0x50] ss:$8 sps:$4 sm:$0xff]  }
  0xb1   :  { %1874 = vmatpush1.bf16.msra.mxu1 %v3310_v61  ;;  %v3385_v61 = vld [vmem:[#allocation2 + $0x4ec] ss:$16 sps:$4 sm:$0xff]  }
  0xb2   :  { %1792 = vmatpush1.bf16.msra.mxu0 %v3307_v60  ;;  %1875 = vmatprep.subr.bf16.mxu1 %v3318_v63  ;;  %v3380_v60 = vld [vmem:[#allocation2 + $0x4c8] ss:$16 sps:$4 sm:$0xff]   ;;  %v3481_v63 = vld [vmem:[%s4024_s3 + $0x74] ss:$8 sps:$4 sm:$0xff]  }
  0xb3   :  { %1793 = vmatprep.subr.bf16.mxu0 %v3315_v62  ;;  %v3476_v62 = vld [vmem:[%s4024_s3 + $0x60] ss:$8 sps:$4 sm:$0xff]  }
  0xb5   :  { %1876 = vmatpush1.bf16.msra.mxu1 %v3316_v1  ;;  %v3388_v1 = vld [vmem:[#allocation2 + $0x50c] ss:$16 sps:$4 sm:$0xff]  }
  0xb6   :  { %1794 = vmatpush1.bf16.msra.mxu0 %v3313_v0  ;;  %1877 = vmatprep.subr.bf16.mxu1 %v3324_v4  ;;  %v3383_v0 = vld [vmem:[#allocation2 + $0x4e8] ss:$16 sps:$4 sm:$0xff]   ;;  %v3484_v4 = vld [vmem:[%s4024_s3 + $0x84] ss:$8 sps:$4 sm:$0xff]  }
  0xb7   :  { %1795 = vmatprep.subr.bf16.mxu0 %v3321_v2  ;;  %v3479_v2 = vld [vmem:[%s4024_s3 + $0x70] ss:$8 sps:$4 sm:$0xff]  }
  0xb9   :  { %1878 = vmatpush1.bf16.msra.mxu1 %v3322_v6  ;;  %v3391_v6 = vld [vmem:[#allocation2 + $0x52c] ss:$16 sps:$4 sm:$0xff]  }
  0xba   :  { %1796 = vmatpush1.bf16.msra.mxu0 %v3319_v5  ;;  %1879 = vmatprep.subr.bf16.mxu1 %v3330_v8  ;;  %v3386_v5 = vld [vmem:[#allocation2 + $0x508] ss:$16 sps:$4 sm:$0xff]   ;;  %v3487_v8 = vld [vmem:[%s4024_s3 + $0x94] ss:$8 sps:$4 sm:$0xff]  }
  0xbb   :  { %1797 = vmatprep.subr.bf16.mxu0 %v3327_v7  ;;  %v3482_v7 = vld [vmem:[%s4024_s3 + $0x80] ss:$8 sps:$4 sm:$0xff]  }
  0xbd   :  { %1880 = vmatpush1.bf16.msra.mxu1 %v3328_v10  ;;  %v3394_v10 = vld [vmem:[#allocation2 + $0x54c] ss:$16 sps:$4 sm:$0xff]  }
  0xbe   :  { %1798 = vmatpush1.bf16.msra.mxu0 %v3325_v9  ;;  %1881 = vmatprep.subr.bf16.mxu1 %v3336_v12  ;;  %v3389_v9 = vld [vmem:[#allocation2 + $0x528] ss:$16 sps:$4 sm:$0xff]   ;;  %v3490_v12 = vld [vmem:[%s4024_s3 + $0xa4] ss:$8 sps:$4 sm:$0xff]  }
  0xbf   :  { %1799 = vmatprep.subr.bf16.mxu0 %v3333_v11  ;;  %v3485_v11 = vld [vmem:[%s4024_s3 + $0x90] ss:$8 sps:$4 sm:$0xff]  }
  0xc1   :  { %1882 = vmatpush1.bf16.msra.mxu1 %v3334_v14  ;;  %v3397_v14 = vld [vmem:[#allocation2 + $0x56c] ss:$16 sps:$4 sm:$0xff]  }
  0xc2   :  { %1800 = vmatpush1.bf16.msra.mxu0 %v3331_v13  ;;  %1883 = vmatprep.subr.bf16.mxu1 %v3342_v17  ;;  %v3392_v13 = vld [vmem:[#allocation2 + $0x548] ss:$16 sps:$4 sm:$0xff]   ;;  %v3493_v17 = vld [vmem:[%s4024_s3 + $0xb4] ss:$8 sps:$4 sm:$0xff]  }
  0xc3   :  { %1801 = vmatprep.subr.bf16.mxu0 %v3339_v15  ;;  %v3488_v15 = vld [vmem:[%s4024_s3 + $0xa0] ss:$8 sps:$4 sm:$0xff]  }
  0xc5   :  { %1884 = vmatpush1.bf16.msra.mxu1 %v3340_v20  ;;  %v3400_v20 = vld [vmem:[#allocation2 + $0x58c] ss:$16 sps:$4 sm:$0xff]  }
  0xc6   :  { %1802 = vmatpush1.bf16.msra.mxu0 %v3337_v19  ;;  %1885 = vmatprep.subr.bf16.mxu1 %v3348_v22  ;;  %v3395_v19 = vld [vmem:[#allocation2 + $0x568] ss:$16 sps:$4 sm:$0xff]   ;;  %v3496_v22 = vld [vmem:[%s4024_s3 + $0xc4] ss:$8 sps:$4 sm:$0xff]  }
  0xc7   :  { %1803 = vmatprep.subr.bf16.mxu0 %v3345_v21  ;;  %v3491_v21 = vld [vmem:[%s4024_s3 + $0xb0] ss:$8 sps:$4 sm:$0xff]  }
  0xc9   :  { %1886 = vmatpush1.bf16.msra.mxu1 %v3346_v25  ;;  %v3403_v25 = vld [vmem:[#allocation2 + $0x5ac] ss:$16 sps:$4 sm:$0xff]  }
  0xca   :  { %1804 = vmatpush1.bf16.msra.mxu0 %v3343_v23  ;;  %1887 = vmatprep.subr.bf16.mxu1 %v3354_v27  ;;  %v3398_v23 = vld [vmem:[#allocation2 + $0x588] ss:$16 sps:$4 sm:$0xff]   ;;  %v3499_v27 = vld [vmem:[%s4024_s3 + $0xd4] ss:$8 sps:$4 sm:$0xff]  }
  0xcb   :  { %1805 = vmatprep.subr.bf16.mxu0 %v3351_v26  ;;  %v3494_v26 = vld [vmem:[%s4024_s3 + $0xc0] ss:$8 sps:$4 sm:$0xff]  }
  0xcd   :  { %1888 = vmatpush1.bf16.msra.mxu1 %v3352_v29  ;;  %v3406_v29 = vld [vmem:[#allocation2 + $0x5cc] ss:$16 sps:$4 sm:$0xff]  }
  0xce   :  { %1806 = vmatpush1.bf16.msra.mxu0 %v3349_v28  ;;  %1889 = vmatprep.subr.bf16.mxu1 %v3360_v49  ;;  %v3401_v28 = vld [vmem:[#allocation2 + $0x5a8] ss:$16 sps:$4 sm:$0xff]  }
  0xcf   :  { %1807 = vmatprep.subr.bf16.mxu0 %v3357_v31  ;;  %v3497_v31 = vld [vmem:[%s4024_s3 + $0xd0] ss:$8 sps:$4 sm:$0xff]  }
  0xd0   :  { %v3404_v49 = vld [vmem:[#allocation2 + $0x5c8] ss:$16 sps:$4 sm:$0xff]  }
  0xd1   :  { %1890 = vmatpush1.bf16.msra.mxu1 %v3358_v33  ;;  %v3407_v33 = vld [vmem:[#allocation2 + $0x5e8] ss:$16 sps:$4 sm:$0xff]  }
  0xd2   :  { %1808 = vmatpush1.bf16.msra.mxu0 %v3355_v32  ;;  %1900 = vmatprep.subr.bf16.mxu1 %v3364_v35  ;;  %v3409_v32 = vld [vmem:[#allocation2 + $0x5ec] ss:$16 sps:$4 sm:$0xff]  }
  0xd3   :  { %2386 = vmatprep.subr.bf16.mxu0 %v3460_v40  ;;  %v3412_v35 = vld [vmem:[#allocation2 + $0x60c] ss:$16 sps:$4 sm:$0xff]  }
  0xd4   :  { %1892 = vmatmul.mubr.bf16.vlgmr.msra.gmra.mrb[4].mxu1 %v3694_v18  ;;  %v3461_v18 = vld [vmem:[%s4024_s3 + $0x10] ss:$8 sps:$4 sm:$0xff]   ;;  %v3418_v40 = vld [vmem:[#allocation2 + $0x64c] ss:$16 sps:$4 sm:$0xff]  }
  0xd5   :  { %1810 = vmatmul.mubr.bf16.vlgmr.msra.gmra.mrb[0].mxu0 %v3731_v37  ;;  %1901 = vmatpush1.bf16.msra.mxu1 %v3362_v36  ;;  %v3410_v36 = vld [vmem:[#allocation2 + $0x608] ss:$16 sps:$4 sm:$0xff]  }
  0xd6   :  { %1932 = vmatprep.mubr.bf16.mxu1 %v3709_v51  ;;  %1902 = vmatprep.subr.bf16.mxu1 %v3367_v38  ;;  %v3373_v51 = vld [vmem:[#allocation2 + $0x46c] ss:$16 sps:$4 sm:$0xff]  }
  0xd7   :  { %2387 = vmatpush1.bf16.msra.mxu0 %v3458_v39  ;;  %v3415_v38 = vld [vmem:[#allocation2 + $0x62c] ss:$16 sps:$4 sm:$0xff]   ;;  %v3413_v39 = vld [vmem:[#allocation2 + $0x628] ss:$16 sps:$4 sm:$0xff]  }
  0xd8   :  { %2388 = vmatprep.subr.bf16.mxu0 %v3463_v24  ;;  %v3421_v24 = vld [vmem:[#allocation2 + $0x66c] ss:$16 sps:$4 sm:$0xff]  }
  0xd9   :  { %1903 = vmatpush1.bf16.msra.mxu1 %v3365_v41  ;;  %v3416_v41 = vld [vmem:[#allocation2 + $0x648] ss:$16 sps:$4 sm:$0xff]  }
  0xda   :  { %1904 = vmatprep.subr.bf16.mxu1 %v3370_v16  ;;  %v3419_v16 = vld [vmem:[#allocation2 + $0x668] ss:$16 sps:$4 sm:$0xff]  }
  0xdb   :  { %2389 = vmatpush1.bf16.msra.mxu0 %v3461_v18  ;;  %v3424_v18 = vld [vmem:[#allocation2 + $0x68c] ss:$16 sps:$4 sm:$0xff]  }
  0xdc   :  { %2390 = vmatprep.subr.bf16.mxu0 %v3466_v42  ;;  %v3422_v42 = vld [vmem:[#allocation2 + $0x688] ss:$16 sps:$4 sm:$0xff]  }
  0xdd   :  { %1905 = vmatpush1.bf16.msra.mxu1 %v3368_v44  ;;  %v3427_v44 = vld [vmem:[#allocation2 + $0x6ac] ss:$16 sps:$4 sm:$0xff]  }
  0xde   :  { %1906 = vmatprep.subr.bf16.mxu1 %v3373_v51  ;;  %v3430_v51 = vld [vmem:[#allocation2 + $0x6cc] ss:$16 sps:$4 sm:$0xff]  }
  0xdf   :  { %2391 = vmatpush1.bf16.msra.mxu0 %v3464_v45 }
  0xe0   :  { %2392 = vmatprep.subr.bf16.mxu0 %v3469_v3 }
  0xe1   :  { %1907 = vmatpush1.bf16.msra.mxu1 %v3371_v46  ;;  %v3500_v46 = vld [vmem:[%s4024_s3 + $0xe0] ss:$8 sps:$4 sm:$0xff]  }
  0xe2   :  { %1908 = vmatprep.subr.bf16.mxu1 %v3376_v47 }
  0xe3   :  { %2393 = vmatpush1.bf16.msra.mxu0 %v3467_v48  ;;  %v3428_v48 = vld [vmem:[#allocation2 + $0x6c8] ss:$16 sps:$4 sm:$0xff]  }
  0xe4   :  { %2394 = vmatprep.subr.bf16.mxu0 %v3472_v50 }
  0xe5   :  { %1909 = vmatpush1.bf16.msra.mxu1 %v3374_v52  ;;  %v3433_v52 = vld [vmem:[#allocation2 + $0x6ec] ss:$16 sps:$4 sm:$0xff]  }
  0xe6   :  { %1910 = vmatprep.subr.bf16.mxu1 %v3379_v53  ;;  %v3505_v53 = vld [vmem:[%s4024_s3 + $0xf4] ss:$8 sps:$4 sm:$0xff]  }
  0xe7   :  { %2395 = vmatpush1.bf16.msra.mxu0 %v3470_v54  ;;  %v3503_v54 = vld [vmem:[%s4024_s3 + $0xf0] ss:$8 sps:$4 sm:$0xff]  }
  0xe8   :  { %2396 = vmatprep.subr.bf16.mxu0 %v3475_v55  ;;  %v3431_v55 = vld [vmem:[#allocation2 + $0x6e8] ss:$16 sps:$4 sm:$0xff]  }
  0xe9   :  { %1911 = vmatpush1.bf16.msra.mxu1 %v3377_v56  ;;  %v3436_v56 = vld [vmem:[#allocation2 + $0x70c] ss:$16 sps:$4 sm:$0xff]  }
  0xea   :  { %1912 = vmatprep.subr.bf16.mxu1 %v3382_v57  ;;  %v3508_v57 = vld [vmem:[%s4024_s3 + $0x104] ss:$8 sps:$4 sm:$0xff]  }
  0xeb   :  { %2397 = vmatpush1.bf16.msra.mxu0 %v3473_v58  ;;  %v3434_v58 = vld [vmem:[#allocation2 + $0x708] ss:$16 sps:$4 sm:$0xff]  }
  0xec   :  { %2398 = vmatprep.subr.bf16.mxu0 %v3478_v59  ;;  %v3439_v59 = vld [vmem:[#allocation2 + $0x72c] ss:$16 sps:$4 sm:$0xff]  }
  0xed   :  { %1913 = vmatpush1.bf16.msra.mxu1 %v3380_v60  ;;  %v3437_v60 = vld [vmem:[#allocation2 + $0x728] ss:$16 sps:$4 sm:$0xff]  }
  0xee   :  { %1914 = vmatprep.subr.bf16.mxu1 %v3385_v61  ;;  %v3442_v61 = vld [vmem:[#allocation2 + $0x74c] ss:$16 sps:$4 sm:$0xff]  }
  0xef   :  { %2399 = vmatpush1.bf16.msra.mxu0 %v3476_v62  ;;  %v3440_v62 = vld [vmem:[#allocation2 + $0x748] ss:$16 sps:$4 sm:$0xff]  }
  0xf0   :  { %2400 = vmatprep.subr.bf16.mxu0 %v3481_v63  ;;  %v3445_v63 = vld [vmem:[#allocation2 + $0x76c] ss:$16 sps:$4 sm:$0xff]  }
  0xf1   :  { %1915 = vmatpush1.bf16.msra.mxu1 %v3383_v0  ;;  %v3443_v0 = vld [vmem:[#allocation2 + $0x768] ss:$16 sps:$4 sm:$0xff]  }
  0xf2   :  { %1916 = vmatprep.subr.bf16.mxu1 %v3388_v1  ;;  %v3448_v1 = vld [vmem:[#allocation2 + $0x78c] ss:$16 sps:$4 sm:$0xff]  }
  0xf3   :  { %2401 = vmatpush1.bf16.msra.mxu0 %v3479_v2  ;;  %v3446_v2 = vld [vmem:[#allocation2 + $0x788] ss:$16 sps:$4 sm:$0xff]  }
  0xf4   :  { %2402 = vmatprep.subr.bf16.mxu0 %v3484_v4  ;;  %v3451_v4 = vld [vmem:[#allocation2 + $0x7ac] ss:$16 sps:$4 sm:$0xff]  }
  0xf5   :  { %1917 = vmatpush1.bf16.msra.mxu1 %v3386_v5  ;;  %v3449_v5 = vld [vmem:[#allocation2 + $0x7a8] ss:$16 sps:$4 sm:$0xff]  }
  0xf6   :  { %1918 = vmatprep.subr.bf16.mxu1 %v3391_v6  ;;  %v3454_v6 = vld [vmem:[#allocation2 + $0x7cc] ss:$16 sps:$4 sm:$0xff]  }
  0xf7   :  { %2403 = vmatpush1.bf16.msra.mxu0 %v3482_v7  ;;  %v3452_v7 = vld [vmem:[#allocation2 + $0x7c8] ss:$16 sps:$4 sm:$0xff]  }
  0xf8   :  { %2404 = vmatprep.subr.bf16.mxu0 %v3487_v8  ;;  %v3457_v8 = vld [vmem:[#allocation2 + $0x7ec] ss:$16 sps:$4 sm:$0xff]  }
  0xf9   :  { %1919 = vmatpush1.bf16.msra.mxu1 %v3389_v9  ;;  %v3455_v9 = vld [vmem:[#allocation2 + $0x7e8] ss:$16 sps:$4 sm:$0xff]  }
  0xfa   :  { %1920 = vmatprep.subr.bf16.mxu1 %v3394_v10  ;;  %v356_v10 = vsub.s32 0, %v3679_v43 }
  0xfb   :  { %2405 = vmatpush1.bf16.msra.mxu0 %v3485_v11  ;;  %v3842_v11 = vld [vmem:[%s4023_s2] sm:$0xf] }
  0xfc   :  { %2406 = vmatprep.subr.bf16.mxu0 %v3490_v12  ;;  %v360_v12 = vsub.s32 1, %v3679_v43 }
  0xfd   :  { %1921 = vmatpush1.bf16.msra.mxu1 %v3392_v13  ;;  %v357_v13 = vrot.slane %v3842_v11, %v356_v10 }
  0xfe   :  { %1922 = vmatprep.subr.bf16.mxu1 %v3397_v14  ;;  %v361_v14 = vrot.slane %v3842_v11, %v360_v12 }
  0xff   :  { %2407 = vmatpush1.bf16.msra.mxu0 %v3488_v15 }
 0x100   :  { %2408 = vmatprep.subr.bf16.mxu0 %v3493_v17 }
 0x101   :  { %1923 = vmatpush1.bf16.msra.mxu1 %v3395_v19 }
 0x102   :  { %1924 = vmatprep.subr.bf16.mxu1 %v3400_v20 }
 0x103   :  { %2409 = vmatpush1.bf16.msra.mxu0 %v3491_v21 }
 0x104   :  { %2410 = vmatprep.subr.bf16.mxu0 %v3496_v22 }
 0x105   :  { %1925 = vmatpush1.bf16.msra.mxu1 %v3398_v23 }
 0x106   :  { %1926 = vmatprep.subr.bf16.mxu1 %v3403_v25 }
 0x107   :  { %2411 = vmatpush1.bf16.msra.mxu0 %v3494_v26 }
 0x108   :  { %2412 = vmatprep.subr.bf16.mxu0 %v3499_v27 }
 0x109   :  { %1927 = vmatpush1.bf16.msra.mxu1 %v3401_v28  ;;  %v3506_v28 = vld [vmem:[%s4024_s3 + $0x100] ss:$8 sps:$4 sm:$0xff]  }
 0x10a   :  { %1928 = vmatprep.subr.bf16.mxu1 %v3406_v29 }
 0x10b   :  { %2413 = vmatpush1.bf16.msra.mxu0 %v3497_v31  ;;  %v3511_v31 = vld [vmem:[%s4024_s3 + $0x114] ss:$8 sps:$4 sm:$0xff]  }
 0x10d   :  { %1929 = vmatpush1.bf16.msra.mxu1 %v3404_v49  ;;  %v3554_v49 = vld [vmem:[%s4026_s5 + $0x40] sm:$0xff]  }
 0x10e   :  { %1930 = vmatprep.subr.bf16.mxu1 %v3409_v32  ;;  %v3555_v32 = vld [vmem:[%s4026_s5] sm:$0xff]  }
 0x111   :  { %1931 = vmatpush1.bf16.msra.mxu1 %v3407_v33  ;;  %v3556_v33 = vld [vmem:[%s4026_s5 + $0x48] sm:$0xff]  }
 0x112   :  { %1941 = vmatprep.subr.bf16.mxu1 %v3412_v35  ;;  %v3509_v35 = vld [vmem:[%s4024_s3 + $0x110] ss:$8 sps:$4 sm:$0xff]  }
 0x114   :  { %1933 = vmatmul.mubr.bf16.vlgmr.msra.gmra.mrb[4].mxu1 %v3721_v30  ;;  %v3425_v30 = vld [vmem:[#allocation2 + $0x6a8] ss:$16 sps:$4 sm:$0xff]  }
 0x115   :  { %1942 = vmatpush1.bf16.msra.mxu1 %v3410_v36  ;;  %1973 = vmatprep.mubr.bf16.mxu1 %v3723_v34  ;;  %v3502_v34 = vld [vmem:[%s4024_s3 + $0xe4] ss:$8 sps:$4 sm:$0xff]  }
 0x116   :  { %1943 = vmatprep.subr.bf16.mxu1 %v3415_v38  ;;  %2414 = vmatprep.subr.bf16.mxu0 %v3502_v34  ;;  %v3514_v36 = vld [vmem:[%s4024_s3 + $0x124] ss:$8 sps:$4 sm:$0xff]   ;;  %v3523_v34 = vld [vmem:[%s4024_s3 + $0x154] ss:$8 sps:$4 sm:$0xff]  }
 0x117   :  { %2415 = vmatpush1.bf16.msra.mxu0 %v3500_v46  ;;  %v3557_v38 = vld [vmem:[%s4026_s5 + $0x8] sm:$0xff]  }
 0x118   :  { %2416 = vmatprep.subr.bf16.mxu0 %v3505_v53  ;;  %v3564_v46 = vld [vmem:[%s4026_s5 + $0x68] sm:$0xff]   ;;  %v3527_v53 = vld [vmem:[%s4024_s3 + $0x170] ss:$8 sps:$4 sm:$0xff]  }
 0x119   :  { %1944 = vmatpush1.bf16.msra.mxu1 %v3413_v39  ;;  %v3558_v39 = vld [vmem:[%s4026_s5 + $0x50] sm:$0xff]  }
 0x11a   :  { %1945 = vmatprep.subr.bf16.mxu1 %v3418_v40  ;;  %v3512_v40 = vld [vmem:[%s4024_s3 + $0x120] ss:$8 sps:$4 sm:$0xff]  }
 0x11b   :  { %2417 = vmatpush1.bf16.msra.mxu0 %v3503_v54  ;;  %v3532_v54 = vld [vmem:[%s4024_s3 + $0x184] ss:$8 sps:$4 sm:$0xff]  }
 0x11c   :  { %2427 = vmatprep.subr.bf16.mxu0 %v3508_v57  ;;  %v3533_v57 = vld [vmem:[%s4024_s3 + $0x190] ss:$8 sps:$4 sm:$0xff]  }
 0x11d   :  { %1946 = vmatpush1.bf16.msra.mxu1 %v3416_v41  ;;  %v3517_v41 = vld [vmem:[%s4024_s3 + $0x134] ss:$8 sps:$4 sm:$0xff]  }
 0x11e   :  { %1947 = vmatprep.subr.bf16.mxu1 %v3421_v24  ;;  %v3559_v24 = vld [vmem:[%s4026_s5 + $0x10] sm:$0xff]  }
 0x121   :  { %1948 = vmatpush1.bf16.msra.mxu1 %v3419_v16  ;;  %v3560_v16 = vld [vmem:[%s4026_s5 + $0x58] sm:$0xff]  }
 0x122   :  { %1949 = vmatprep.subr.bf16.mxu1 %v3424_v18  ;;  %v3515_v18 = vld [vmem:[%s4024_s3 + $0x130] ss:$8 sps:$4 sm:$0xff]  }
 0x125   :  { %1950 = vmatpush1.bf16.msra.mxu1 %v3422_v42  ;;  %v3520_v42 = vld [vmem:[%s4024_s3 + $0x144] ss:$8 sps:$4 sm:$0xff]  }
 0x126   :  { %1951 = vmatprep.subr.bf16.mxu1 %v3427_v44  ;;  %v3561_v44 = vld [vmem:[%s4026_s5 + $0x18] sm:$0xff]  }
 0x127   :  { %v1688_v45 = vpop.f32.mrb[0].mxu1 }
 0x128   :  { %v1690_v47 = vpop.f32.mrb[1].mxu1  ;;  %v1689_v15 = vadd.f32 %v1688_v45, %v357_v13  ;;  %v3563_v45 = vld [vmem:[%s4026_s5 + $0x20] sm:$0xff]  }
 0x129   :  { %v1692_v3 = vpop.f32.mrb[2].mxu1  ;;  %1952 = vmatpush1.bf16.msra.mxu1 %v3425_v30  ;;  %v1691_v17 = vadd.f32 %v1690_v47, %v361_v14  ;;  %v3562_v30 = vld [vmem:[%s4026_s5 + $0x60] sm:$0xff]   ;;  %v3521_v47 = vld [vmem:[%s4024_s3 + $0x150] ss:$8 sps:$4 sm:$0xff]  }
 0x12a   :  { %v1693_v50 = vpop.f32.mrb[3].mxu1  ;;  %1953 = vmatprep.subr.bf16.mxu1 %v3430_v51  ;;  %v3518_v51 = vld [vmem:[%s4024_s3 + $0x140] ss:$8 sps:$4 sm:$0xff]   ;;  %v3526_v3 = vld [vmem:[%s4024_s3 + $0x164] ss:$8 sps:$4 sm:$0xff]  }
 0x12b   :  { %v3524_v50 = vld [vmem:[%s4024_s3 + $0x160] ss:$8 sps:$4 sm:$0xff]  }
 0x12d   :  { %1954 = vmatpush1.bf16.msra.mxu1 %v3428_v48  ;;  %v3565_v48 = vld [vmem:[%s4026_s5 + $0x28] sm:$0xff]  }
 0x12e   :  { %1955 = vmatprep.subr.bf16.mxu1 %v3433_v52  ;;  %v3529_v52 = vld [vmem:[%s4024_s3 + $0x174] ss:$8 sps:$4 sm:$0xff]  }
 0x131   :  { %1956 = vmatpush1.bf16.msra.mxu1 %v3431_v55  ;;  %v3530_v55 = vld [vmem:[%s4024_s3 + $0x180] ss:$8 sps:$4 sm:$0xff]  }
 0x132   :  { %1957 = vmatprep.subr.bf16.mxu1 %v3436_v56  ;;  %v3535_v56 = vld [vmem:[%s4024_s3 + $0x194] ss:$8 sps:$4 sm:$0xff]  }
 0x135   :  { %1958 = vmatpush1.bf16.msra.mxu1 %v3434_v58  ;;  %v3538_v58 = vld [vmem:[%s4024_s3 + $0x1a4] ss:$8 sps:$4 sm:$0xff]  }
 0x136   :  { %1959 = vmatprep.subr.bf16.mxu1 %v3439_v59  ;;  %v3536_v59 = vld [vmem:[%s4024_s3 + $0x1a0] ss:$8 sps:$4 sm:$0xff]  }
 0x139   :  { %1960 = vmatpush1.bf16.msra.mxu1 %v3437_v60  ;;  %v3541_v60 = vld [vmem:[%s4024_s3 + $0x1b4] ss:$8 sps:$4 sm:$0xff]  }
 0x13a   :  { %1961 = vmatprep.subr.bf16.mxu1 %v3442_v61  ;;  %v3539_v61 = vld [vmem:[%s4024_s3 + $0x1b0] ss:$8 sps:$4 sm:$0xff]  }
 0x13d   :  { %1962 = vmatpush1.bf16.msra.mxu1 %v3440_v62  ;;  %v3544_v62 = vld [vmem:[%s4024_s3 + $0x1c4] ss:$8 sps:$4 sm:$0xff]  }
 0x13e   :  { %1963 = vmatprep.subr.bf16.mxu1 %v3445_v63  ;;  %v3542_v63 = vld [vmem:[%s4024_s3 + $0x1c0] ss:$8 sps:$4 sm:$0xff]  }
 0x141   :  { %1964 = vmatpush1.bf16.msra.mxu1 %v3443_v0  ;;  %v3547_v0 = vld [vmem:[%s4024_s3 + $0x1d4] ss:$8 sps:$4 sm:$0xff]  }
 0x142   :  { %1965 = vmatprep.subr.bf16.mxu1 %v3448_v1  ;;  %v3545_v1 = vld [vmem:[%s4024_s3 + $0x1d0] ss:$8 sps:$4 sm:$0xff]  }
 0x145   :  { %1966 = vmatpush1.bf16.msra.mxu1 %v3446_v2  ;;  %v3550_v2 = vld [vmem:[%s4024_s3 + $0x1e4] ss:$8 sps:$4 sm:$0xff]  }
 0x146   :  { %1967 = vmatprep.subr.bf16.mxu1 %v3451_v4  ;;  %v3548_v4 = vld [vmem:[%s4024_s3 + $0x1e0] ss:$8 sps:$4 sm:$0xff]  }
 0x149   :  { %1968 = vmatpush1.bf16.msra.mxu1 %v3449_v5  ;;  %v3553_v5 = vld [vmem:[%s4024_s3 + $0x1f4] ss:$8 sps:$4 sm:$0xff]  }
 0x14a   :  { %1969 = vmatprep.subr.bf16.mxu1 %v3454_v6  ;;  %v3551_v6 = vld [vmem:[%s4024_s3 + $0x1f0] ss:$8 sps:$4 sm:$0xff]  }
 0x14d   :  { %1970 = vmatpush1.bf16.msra.mxu1 %v3452_v7  ;;  %v364_v7 = vsub.s32 2, %v3679_v43 }
 0x14e   :  { %1971 = vmatprep.subr.bf16.mxu1 %v3457_v8  ;;  %v368_v8 = vsub.s32 3, %v3679_v43 }
 0x150   :  { %v369_v13 = vrot.slane %v3842_v11, %v368_v8 }
 0x151   :  { %1972 = vmatpush1.bf16.msra.mxu1 %v3455_v9  ;;  %v365_v9 = vrot.slane %v3842_v11, %v364_v7  ;;  %v3567_v11 = vld [vmem:[%s4026_s5 + $0x30] sm:$0xff]  }
 0x152   :  { %3013 = vmatprep.subr.bf16.mxu1 %v3554_v49 }
 0x154   :  { %1974 = vmatmul.mubr.bf16.vlgmr.msra.gmra.mrb[4].mxu1 %v3731_v37 }
 0x155   :  { %3014 = vmatpush3.bf16.msra.mxu1 %v3555_v32 }
 0x156   :  { %3015 = vmatprep.subr.bf16.mxu1 %v3556_v33 }
 0x159   :  { %3016 = vmatpush3.bf16.msra.mxu1 %v3557_v38 }
 0x15a   :  { %3017 = vmatprep.subr.bf16.mxu1 %v3558_v39 }
 0x15d   :  { %3018 = vmatpush3.bf16.msra.mxu1 %v3559_v24 }
 0x15e   :  { %3019 = vmatprep.subr.bf16.mxu1 %v3560_v16 }
 0x161   :  { %3020 = vmatpush3.bf16.msra.mxu1 %v3561_v44 }
 0x162   :  { %3021 = vmatprep.subr.bf16.mxu1 %v3562_v30 }
 0x165   :  { %3022 = vmatpush3.bf16.msra.mxu1 %v3563_v45 }
 0x166   :  { %3023 = vmatprep.subr.bf16.mxu1 %v3564_v46 }
 0x169   :  { %3024 = vmatpush3.bf16.msra.mxu1 %v3565_v48 }
 0x1a8   :  { %v1811_v37 = vpop.f32.mrb[0].mxu0 }
 0x1a9   :  { %v3036_v19 = vadd.f32 %v1811_v37, %v1689_v15  ;;  %v1813_v20 = vpop.f32.mrb[1].mxu0 }
 0x1aa   :  { %v3038_v21 = vadd.f32 %v1813_v20, %v1691_v17  ;;  %v1815_v22 = vpop.f32.mrb[2].mxu0 }
 0x1ab   :  { %v1982_v23 = vmax.f32 %v3036_v19, 0.0  ;;  %v1816_v25 = vpop.f32.mrb[3].mxu0 }
 0x1ac   :  { %v1983_v26 = vmax.f32 %v3038_v21, 0.0 }
 0x1ad   :  { %v1986_v29 = vpack.c.bf16 %v1982_v23, %v1982_v23 }
 0x1ae   :  { %v1987_v27 = vpack.c.bf16 %v1983_v26, %v1983_v26  ;;  %v3566_v26 = vld [vmem:[%s4026_s5 + $0x70] sm:$0xff]  }
 0x1af   :  { %3025 = vmatprep.subr.bf16.mxu1 %v3566_v26 }
 0x1b0   :  { %2418 = vmatprep.mubr.bf16.mxu0 %v1987_v27  ;;  %3026 = vmatpush3.bf16.msra.mxu1 %v3567_v11  ;;  %v3568_v27 = vld [vmem:[%s4026_s5 + $0x78] sm:$0xff]  }
 0x1b1   :  { %2419 = vmatmul.mubr.bf16.vlgmr.msra.gmra.mrb[4].mxu0 %v1986_v29  ;;  %3027 = vmatprep.subr.bf16.mxu1 %v3568_v27  ;;  %v2054_v29 = vld [vmem:[%s4025_s4] sm:$0x3] }
 0x1b2   :  { %2428 = vmatpush1.bf16.msra.mxu0 %v3506_v28  ;;  %v3569_v28 = vld [vmem:[%s4026_s5 + $0x38] sm:$0xff]   ;;  %v2063_v49 = vrot.slane %v2054_v29, %v360_v12 }
 0x1b3   :  { %2429 = vmatprep.subr.bf16.mxu0 %v3511_v31  ;;  %v2059_v31 = vrot.slane %v2054_v29, %v356_v10  ;;  %v2996_v10 = vld [vmem:[%s4027_s6] ss:$0 sm:$0xff]  ;;  %s3626_s6 = smov [#allocation5]  }
 0x1b4   :  { %3028 = vmatpush3.bf16.msra.mxu1 %v3569_v28  ;;  %s2667_s26 = sshll.u32 %s3626_s6, 4  ;;  %s2668_s26 = int_to_ptr.vmem [resolvable:$true] %s2667_s26 }
 0x1b5   :  { %s3596_s27 = scalar_lea.vmem %s2668_s26, 32  ;;  %p3601_p9 = scmp.lt.s32.totalorder %s2668_s26, %s2668_s26 }
 0x1b6   :  { %2430 = vmatpush1.bf16.msra.mxu0 %v3509_v35  ;;  %p3597_p8 = scmp.ne.s32.totalorder %s2668_s26, %s3596_s27  ;;  %p3602_p10 = scmp.lt.s32.totalorder %s3596_s27, %s3596_s27 }
 0x1b7   :  { %2431 = vmatprep.subr.bf16.mxu0 %v3514_v36 }
 0x1b8   :  { %p3603_p11 = por %p3602_p10, %p3601_p9 }
 0x1ba   :  { %2432 = vmatpush1.bf16.msra.mxu0 %v3512_v40  ;;  %p3604_p12 = pnand %p3603_p11, %p3597_p8 }
 0x1bb   :  { %2433 = vmatprep.subr.bf16.mxu0 %v3517_v41 }
 0x1be   :  { %2434 = vmatpush1.bf16.msra.mxu0 %v3515_v18 }
 0x1bf   :  { %2435 = vmatprep.subr.bf16.mxu0 %v3520_v42 }
 0x1c2   :  { %2436 = vmatpush1.bf16.msra.mxu0 %v3518_v51 }
 0x1c3   :  { %2437 = vmatprep.subr.bf16.mxu0 %v3523_v34 }
 0x1c6   :  { %2438 = vmatpush1.bf16.msra.mxu0 %v3521_v47 }
 0x1c7   :  { %2439 = vmatprep.subr.bf16.mxu0 %v3526_v3 }
 0x1ca   :  { %2440 = vmatpush1.bf16.msra.mxu0 %v3524_v50 }
 0x1cb   :  { %2441 = vmatprep.subr.bf16.mxu0 %v3529_v52 }
 0x1ce   :  { %2442 = vmatpush1.bf16.msra.mxu0 %v3527_v53 }
 0x1cf   :  { %2443 = vmatprep.subr.bf16.mxu0 %v3532_v54 }
 0x1d2   :  { %2444 = vmatpush1.bf16.msra.mxu0 %v3530_v55 }
 0x1d3   :  { %2445 = vmatprep.subr.bf16.mxu0 %v3535_v56 }
 0x1d6   :  { %2446 = vmatpush1.bf16.msra.mxu0 %v3533_v57 }
 0x1d7   :  { %2447 = vmatprep.subr.bf16.mxu0 %v3538_v58 }
 0x1da   :  { %2448 = vmatpush1.bf16.msra.mxu0 %v3536_v59 }
 0x1db   :  { %2449 = vmatprep.subr.bf16.mxu0 %v3541_v60 }
 0x1de   :  { %2450 = vmatpush1.bf16.msra.mxu0 %v3539_v61 }
 0x1df   :  { %2451 = vmatprep.subr.bf16.mxu0 %v3544_v62 }
 0x1e2   :  { %2452 = vmatpush1.bf16.msra.mxu0 %v3542_v63 }
 0x1e3   :  { %2453 = vmatprep.subr.bf16.mxu0 %v3547_v0 }
 0x1e6   :  { %2454 = vmatpush1.bf16.msra.mxu0 %v3545_v1 }
 0x1e7   :  { %2455 = vmatprep.subr.bf16.mxu0 %v3550_v2 }
 0x1ea   :  { %2456 = vmatpush1.bf16.msra.mxu0 %v3548_v4 }
 0x1eb   :  { %2457 = vmatprep.subr.bf16.mxu0 %v3553_v5 }
 0x1ee   :  { %2458 = vmatpush1.bf16.msra.mxu0 %v3551_v6 }
 0x227   :  { %v1975_v14 = vpop.f32.mrb[4].mxu1 }
 0x228   :  { %v3039_v15 = vadd.f32 %v1975_v14, %v365_v9  ;;  %v1977_v17 = vpop.f32.mrb[5].mxu1 }
 0x229   :  { %v3040_v37 = vadd.f32 %v1977_v17, %v369_v13  ;;  %v1979_v19 = vpop.f32.mrb[6].mxu1 }
 0x22a   :  { %v1984_v20 = vmax.f32 %v3039_v15, 0.0  ;;  %v1980_v21 = vpop.f32.mrb[7].mxu1 }
 0x22b   :  { %v1985_v22 = vmax.f32 %v3040_v37, 0.0 }
 0x22c   :  { %v1988_v25 = vpack.c.bf16 %v1984_v20, %v1984_v20 }
 0x22d   :  { %v1989_v23 = vpack.c.bf16 %v1985_v22, %v1985_v22 }
 0x22f   :  { %2459 = vmatprep.mubr.bf16.mxu0 %v1989_v23 }
 0x230   :  { %2460 = vmatmul.mubr.bf16.vlgmr.msra.gmra.mrb[4].mxu0 %v1988_v25 }
 0x303   :  { %v2461_v32 = vpop.f32.mrb[4].mxu0 }
 0x304   :  { %v3041_v33 = vadd.f32 %v2461_v32, %v2059_v31  ;;  %v2463_v35 = vpop.f32.mrb[5].mxu0 }
 0x305   :  { %v3042_v36 = vadd.f32 %v2463_v35, %v2063_v49  ;;  %v2465_v38 = vpop.f32.mrb[6].mxu0 }
 0x306   :  { %v2468_v39 = vmax.f32 %v3041_v33, 0.0  ;;  %v2466_v40 = vpop.f32.mrb[7].mxu0 }
 0x307   :  { %v2469_v41 = vmax.f32 %v3042_v36, 0.0 }
 0x308   :  { %v2470_v16 = vpack.c.bf16 %v2468_v39, %v2468_v39 }
 0x309   :  { %v2471_v24 = vpack.c.bf16 %v2469_v41, %v2469_v41 }
 0x30b   :  { %2639 = vmatprep.mubr.bf16.mxu1 %v2471_v24 }
 0x30c   :  { %2640 = vmatmul.mubr.bf16.vlgmr.msra.gmra.mrb[8].mxu1 %v2470_v16 }
 0x3df   :  { %v3029_v18 = vpop.f32.mrb[8].mxu1 }
 0x3e0   :  { %v3030_v42 = vpop.f32.mrb[9].mxu1 }
 0x3e1   :  { %v3031_v43 = vadd.f32 %v3030_v42, %v3029_v18  ;;  %v3032_v12 = vpop.f32.mrb[10].mxu1 }
 0x3e2   :  { %v3033_v44 = vpop.f32.mrb[11].mxu1 }
 0x3e3   :  { %v2642_v30 = vadd.f32 %v3031_v43, %v2996_v10 }
 0x3e5   :  { %v2648_v51 = vsel %vm2647_vm0, %v2642_v30, -inf }
 0x3e6   :  { %2649 = vmax.xlane.f32.xlu0 %v2648_v51 }
 0x473   :  { %v2650_v34 = vpop.xlane.xlu0 %2649 }
 0x474   :  { %v2651_v45 = vsub.f32 %v2642_v30, %v2650_v34 }
 0x476   :  { %v2652_v46 = vmul.f32 1.442695, %v2651_v45 }
 0x478   :  { %3570 = vpow2.f32 %v2652_v46 }
 0x482   :  { %v3571_v47 = vpop.eup %3570 }
 0x483   :  { %v2654_v3 = vsel %vm2647_vm0, %v3571_v47, 0.0 }
 0x484   :  { %2655 = vadd.xlane.f32.xlu0 %v2654_v3 }
 0x511   :  { %v2656_v48 = vpop.xlane.xlu0 %2655 }
 0x512   :  { %3572 = vlog2.f32 %v2656_v48 }
 0x51c   :  { %v3573_v50 = vpop.eup %3572 }
 0x51d   :  { %v2658_v52 = vmul.f32 0.6931472, %v3573_v50 }
 0x51f   :  { %v2659_v53 = vsub.f32 %v2651_v45, %v2658_v52 }
 0x521   :  { %2660 = vst.msk [vmem:[#allocation5] sm:$0x3] %vm2647_vm0, %v2659_v53 }
 0x522   :  { %3607 = shalt.err (!%p3604_p12)
}
 0x523   :  { %s3608_s30 = scalar_lea.hbm %s4028_s7, 32 }
 0x524   :  { %p3609_p13 = scmp.ne.s32.totalorder %s4028_s7, %s3608_s30  ;;  %p3612_p0 = scmp.lt.u32.totalorder %s3608_s30, %s4028_s7 }
 0x526   :  { %p3614_p1 = pnand %p3612_p0, %p3609_p13 }
 0x528   :  { %3617 = shalt.err (!%p3614_p1)
}
 0x529   :  { %2670 = dma.vmem_to_hbm [thread:$0]  %s2668_s26, 32, %s4028_s7, [#allocation4]  }
 0x52a   :  { %3620 = dma.done.wait [#allocation4], 32  }
 0x52b   :  { %3621 = vsyncadd [#allocation4], 4294967264 }
 0x52c   :  { %2674 = vsyncpa [#allocation3], 1 }
 0x52d   :  { %2675 = vsyncpa [#allocation4], 1 }

</bundles_post_ra>
